<compile_context>
chip_gen: v6e
topology: v6e:2x2x1
jax: 0.10.0
libtpu: 0.0.40
codegen_flags: <defaults>
</compile_context>

<pallas_src>
import functools

import jax
import jax.numpy as jnp
from jax.experimental import pallas as pl
from jax.experimental.pallas import tpu as pltpu


# ---------------------------------------------------------------------------
# Helpers
# ---------------------------------------------------------------------------
def _round_up(x, m):
    return ((x + m - 1) // m) * m


def _pad2(a, rows, cols):
    """Zero-pad a 2-D array up to (rows, cols)."""
    if a.shape == (rows, cols):
        return a
    return jnp.zeros((rows, cols), a.dtype).at[: a.shape[0], : a.shape[1]].set(a)


def _vmem_limit(need_bytes):
    """Explicit VMEM budget: >= need * 1.25 + margin, capped below v7x 64 MiB physical."""
    return int(max(32 << 20, min(need_bytes + (need_bytes >> 2) + (2 << 20), 48 << 20)))


# Conservative budget for keeping the whole (padded, f32) adjacency resident in VMEM.
# 40 MiB leaves headroom under v7x's 64 MiB physical VMEM (v5e/v6e have 128 MiB).
_FUSED_VMEM_BUDGET = 40 << 20


# ---------------------------------------------------------------------------
# Path 1: fused kernel — whole n_hops propagation in one pallas_call
# ---------------------------------------------------------------------------
def _fused_propagate_kernel(adj_ref, x_ref, agg_ref, *, n_hops):
    adj = adj_ref[...].astype(jnp.float32)   # resident in VMEM, read from HBM once
    emb = x_ref[...].astype(jnp.float32)
    agg = emb                                 # hop-0 term of the sum
    # n_hops is small and static -> fully unrolled at trace time.
    for _ in range(n_hops):
        emb = jnp.dot(adj, emb, preferred_element_type=jnp.float32)
        agg = agg + emb
    agg_ref[...] = agg


@functools.partial(jax.jit, static_argnames=("n_hops",))
def _fused_propagate(adj, x, *, n_hops):
    N, D = x.shape
    N_pad = _round_up(N, 128)
    D_pad = _round_up(D, 128)          # lane-dense (128-wide) feature dim
    adj_p = _pad2(adj, N_pad, N_pad)
    x_p = _pad2(x, N_pad, D_pad)
    need = N_pad * N_pad * adj_p.dtype.itemsize + 6 * N_pad * D_pad * 4
    agg = pl.pallas_call(
        functools.partial(_fused_propagate_kernel, n_hops=n_hops),
        out_shape=jax.ShapeDtypeStruct((N_pad, D_pad), jnp.float32),
        compiler_params=pltpu.CompilerParams(vmem_limit_bytes=_vmem_limit(need)),
    )(adj_p, x_p)
    return agg[:N, :D]


# ---------------------------------------------------------------------------
# Path 2: tiled streaming hop kernel
#   emb_out = adj @ x          (f32 accumulation directly in the resident output block)
#   agg_out = adj @ x + agg_in (running-hop sum fused into the epilogue)
# ---------------------------------------------------------------------------
def _hop_kernel(adj_ref, x_ref, agg_in_ref, emb_out_ref, agg_out_ref, *, tk):
    k = pl.program_id(1)

    @pl.when(k == 0)
    def _():
        emb_out_ref[...] = jnp.zeros_like(emb_out_ref)

    # x is VMEM-resident across the whole K loop; slice the current K tile from it.
    off = pl.multiple_of(k * tk, tk)
    x_tile = x_ref[pl.ds(off, tk), :]
    emb_out_ref[...] += jnp.dot(
        adj_ref[...].astype(jnp.float32), x_tile, preferred_element_type=jnp.float32
    )

    @pl.when(k == pl.num_programs(1) - 1)
    def _():
        agg_out_ref[...] = emb_out_ref[...] + agg_in_ref[...].astype(jnp.float32)


def _hop_call(adj_p, x_p, agg_p, T):
    N_pad, D_pad = x_p.shape
    grid = (N_pad // T, N_pad // T)
    adj_bytes = adj_p.dtype.itemsize
    need = (
        2 * T * T * adj_bytes        # double-buffered adjacency tiles (bf16)
        + T * T * 4                  # in-kernel f32 cast of the adjacency tile
        + 2 * N_pad * D_pad * 4      # resident x (conservatively x2)
        + 2 * T * D_pad * 4          # agg_in tile
        + 4 * T * D_pad * 4          # two double-buffered output tiles
    )
    return pl.pallas_call(
        functools.partial(_hop_kernel, tk=T),
        out_shape=(
            jax.ShapeDtypeStruct((N_pad, D_pad), jnp.float32),
            jax.ShapeDtypeStruct((N_pad, D_pad), jnp.float32),
        ),
        grid_spec=pltpu.PrefetchScalarGridSpec(
            num_scalar_prefetch=0,
            grid=grid,  # 2-D grid: (row tiles, K tiles); reduction axis last
            in_specs=[
                pl.BlockSpec((T, T), lambda i, k: (i, k)),            # adjacency tile
                pl.BlockSpec((N_pad, D_pad), lambda i, k: (0, 0)),    # x: full-K resident
                pl.BlockSpec((T, D_pad), lambda i, k: (i, 0)),        # running sum (input)
            ],
            out_specs=(
                pl.BlockSpec((T, D_pad), lambda i, k: (i, 0)),        # new embeddings
                pl.BlockSpec((T, D_pad), lambda i, k: (i, 0)),        # updated running sum
            ),
        ),
        compiler_params=pltpu.CompilerParams(
            dimension_semantics=("parallel", "arbitrary"),
            vmem_limit_bytes=_vmem_limit(need),
        ),
    )(adj_p, x_p, agg_p)


@functools.partial(
    jax.jit, static_argnames=("n_hops", "tile", "mess_dropout", "mess_dropout_rate")
)
def _tiled_propagate(adj, x, key, *, n_hops, tile, mess_dropout, mess_dropout_rate):
    N, D = x.shape
    tile = max(_round_up(tile, 128), 128)
    T = tile if N >= tile else _round_up(N, 128)
    N_pad = _round_up(N, T)
    D_pad = _round_up(D, 128)          # lane-dense feature dim -> unmasked stores

    adj_p = _pad2(adj, N_pad, N_pad)   # padded once, reused for all hops
    x_p = _pad2(x, N_pad, D_pad)
    emb_p = x_p
    agg_p = x_p                         # hop-0 term

    for _ in range(n_hops):
        if mess_dropout:
            # TODO(synk): torch.nn.Dropout RNG stream is not reproducible bit-exactly;
            # equivalent inverted dropout with jax.random (could be moved in-kernel via
            # pltpu.prng_seed/prng_random_bits if the extra elementwise pass matters).
            emb_raw, _ = _hop_call(adj_p, emb_p, agg_p, T)
            key, sub = jax.random.split(key)
            keep = jax.random.bernoulli(sub, 1.0 - mess_dropout_rate, emb_raw.shape)
            emb_p = jnp.where(keep, emb_raw / (1.0 - mess_dropout_rate), 0.0)
            agg_p = agg_p + emb_p
        else:
            emb_p, agg_p = _hop_call(adj_p, emb_p, agg_p, T)
    return agg_p[:N, :D]


# ---------------------------------------------------------------------------
# GraphConv forward (LightGCN propagation)
# ---------------------------------------------------------------------------
def graph_conv_forward(
    user_emb,
    entity_emb,
    graph_dense,
    *,
    n_hops,
    mess_dropout=False,
    mess_dropout_rate=0.1,
    dropout_key=None,
    adj_dtype=jnp.bfloat16,
    tile=512,
    force_tiled=False,
):
    """Mirrors GraphConv.forward (node_dropout=False path):
        all_embed = cat([user_emb, entity_emb])
        repeat n_hops: all_embed = graph @ all_embed  (+ optional mess dropout)
        sum over all hop outputs (including hop 0), split back into users/entities.
    """
    # TODO(synk): node_dropout (_sparse_dropout on COO indices) is not implemented;
    # this covers the node_dropout=False / eval path of the PyTorch module.
    n_users = user_emb.shape[0]
    all_embed = jnp.concatenate([user_emb, entity_emb], axis=0).astype(jnp.float32)
    N, D = all_embed.shape

    N_pad_fused = _round_up(N, 128)
    D_pad_fused = _round_up(D, 128)
    fused_need = N_pad_fused * N_pad_fused * 4 + 6 * N_pad_fused * D_pad_fused * 4
    use_fused = (not mess_dropout) and (not force_tiled) and fused_need <= _FUSED_VMEM_BUDGET

    if use_fused:
        agg = _fused_propagate(graph_dense.astype(jnp.float32), all_embed, n_hops=n_hops)
    else:
        # Streaming path: bf16 adjacency halves the dominant HBM traffic
        # (accumulation stays in f32 inside the kernel).
        agg = _tiled_propagate(
            graph_dense.astype(adj_dtype),
            all_embed,
            dropout_key,
            n_hops=n_hops,
            tile=tile,
            mess_dropout=mess_dropout,
            mess_dropout_rate=mess_dropout_rate,
        )

    return agg[:n_users], agg[n_users:]


# ---------------------------------------------------------------------------
# Reference (pure JAX) for sanity check
# ---------------------------------------------------------------------------
def graph_conv_reference(user_emb, entity_emb, graph_dense, *, n_hops):
    all_embed = jnp.concatenate([user_emb, entity_emb], axis=0)
    agg = all_embed
    for _ in range(n_hops):
        all_embed = jnp.dot(graph_dense, all_embed, precision=jax.lax.Precision.HIGHEST)
        agg = agg + all_embed
    return agg[: user_emb.shape[0]], agg[user_emb.shape[0]:]


if __name__ == "__main__":
    # Small deterministic setup consistent with the module:
    #   channel (embedding dim) = 64, n_hops = 3, n_users = 64, n_entities = 192
    n_users, n_entities, channel, n_hops = 64, 192, 64, 3
    n_nodes = n_users + n_entities

    key = jax.random.PRNGKey(0)
    k_u, k_e, k_g = jax.random.split(key, 3)

    # xavier_uniform-style init for the embeddings (deterministic, in-script)
    bound_u = (6.0 / (n_users + channel)) ** 0.5
    bound_e = (6.0 / (n_entities + channel)) ** 0.5
    user_emb = jax.random.uniform(k_u, (n_users, channel), jnp.float32, -bound_u, bound_u)
    entity_emb = jax.random.uniform(k_e, (n_entities, channel), jnp.float32, -bound_e, bound_e)

    # Synthetic sparse graph, materialized dense and row-normalized
    # (stands in for the torch sparse COO adjacency passed to forward()).
    mask = (jax.random.uniform(k_g, (n_nodes, n_nodes)) < 0.05).astype(jnp.float32)
    deg = jnp.maximum(mask.sum(axis=1, keepdims=True), 1.0)
    graph_dense = mask / deg

    # --- Path 1: fused single-kernel propagation (graph fits in VMEM) ---------------
    user_res, entity_res = graph_conv_forward(
        user_emb, entity_emb, graph_dense, n_hops=n_hops, mess_dropout=False
    )
    jax.block_until_ready((user_res, entity_res))

    user_ref, entity_ref = graph_conv_reference(
        user_emb, entity_emb, graph_dense, n_hops=n_hops
    )
    assert user_res.shape == (n_users, channel)
    assert entity_res.shape == (n_entities, channel)
    assert jnp.allclose(user_res, user_ref, atol=1e-3, rtol=1e-3)
    assert jnp.allclose(entity_res, entity_ref, atol=1e-3, rtol=1e-3)

    # --- Path 2: tiled streaming path (bf16 adjacency), forced to exercise it -------
    user_t, entity_t = graph_conv_forward(
        user_emb, entity_emb, graph_dense, n_hops=n_hops,
        mess_dropout=False, force_tiled=True, tile=128,  # small tile -> real 2x2 grid
    )
    jax.block_until_ready((user_t, entity_t))

    # Reference for the tiled path uses the same bf16-quantized adjacency.
    adj_q = graph_dense.astype(jnp.bfloat16).astype(jnp.float32)
    user_ref_q, entity_ref_q = graph_conv_reference(
        user_emb, entity_emb, adj_q, n_hops=n_hops
    )
    assert jnp.allclose(user_t, user_ref_q, atol=1e-3, rtol=1e-3)
    assert jnp.allclose(entity_t, entity_ref_q, atol=1e-3, rtol=1e-3)

    print("KERNEL_OK")
</pallas_src>

<mosaic_0001>
module attributes {stable_mosaic.version = 11 : i64} {
  func.func @_fused_propagate_kernel(%arg0: memref<256x256xf32, #tpu.memory_space<vmem>>, %arg1: memref<256x128xf32, #tpu.memory_space<vmem>>, %arg2: memref<256x128xf32, #tpu.memory_space<vmem>>) attributes {dimension_semantics = [], scalar_prefetch = 0 : i64, scratch_operands = 0 : i64, tpu.core_type = #tpu.core_type<tc>} {
    %c0 = arith.constant 0 : index
    %c0_0 = arith.constant 0 : index
    %0 = vector.load %arg0[%c0, %c0_0] : memref<256x256xf32, #tpu.memory_space<vmem>>, vector<256x256xf32>
    %c0_1 = arith.constant 0 : index
    %c0_2 = arith.constant 0 : index
    %1 = vector.load %arg1[%c0_1, %c0_2] : memref<256x128xf32, #tpu.memory_space<vmem>>, vector<256x128xf32>
    %cst = arith.constant dense<0.000000e+00> : vector<256x128xf32>
    %2 = tpu.matmul %0, %1, %cst {dimension_numbers = #tpu.dot_dimension_numbers<[1], [0], [0], [1], [0, 0, 1, 1], [], []>} : vector<256x256xf32>, vector<256x128xf32>, vector<256x128xf32> -> vector<256x128xf32>
    %3 = arith.addf %1, %2 : vector<256x128xf32>
    %cst_3 = arith.constant dense<0.000000e+00> : vector<256x128xf32>
    %4 = tpu.matmul %0, %2, %cst_3 {dimension_numbers = #tpu.dot_dimension_numbers<[1], [0], [0], [1], [0, 0, 1, 1], [], []>} : vector<256x256xf32>, vector<256x128xf32>, vector<256x128xf32> -> vector<256x128xf32>
    %5 = arith.addf %3, %4 : vector<256x128xf32>
    %cst_4 = arith.constant dense<0.000000e+00> : vector<256x128xf32>
    %6 = tpu.matmul %0, %4, %cst_4 {dimension_numbers = #tpu.dot_dimension_numbers<[1], [0], [0], [1], [0, 0, 1, 1], [], []>} : vector<256x256xf32>, vector<256x128xf32>, vector<256x128xf32> -> vector<256x128xf32>
    %7 = arith.addf %5, %6 : vector<256x128xf32>
    %c0_5 = arith.constant 0 : index
    %c0_6 = arith.constant 0 : index
    %8 = vector.load %arg2[%c0_5, %c0_6] : memref<256x128xf32, #tpu.memory_space<vmem>>, vector<256x128xf32>
    tpu.vector_store %arg2[%c0_5, %c0_6], %7 {strides = array<i32>} : memref<256x128xf32, #tpu.memory_space<vmem>>, vector<256x128xf32>,
    return
  }
}

</mosaic_0001>

<bundles_post_ra>
// kernel: _fused_propagate.1
= control target key start
LH: loop header
LB: loop body
LE: loop exit
PB: predicated region body
PF: predicated region fallthrough
CT: control target
= control target key end

     0   :  { %v2219_v0 = vmov 0.0   ;;  %s2216_s1 = inlined_call_operand.vmem [shape: f32[256,128], index: 1, kind: input, shape index: {}]   ;;  %s2217_s0 = inlined_call_operand.vmem [shape: f32[256,256], index: 0, kind: input, shape index: {}]   ;;  %s2218_s2 = inlined_call_operand.vmem [shape: f32[256,128], index: 2, kind: output, shape index: {}]  }
   0x1   :  { %107 = vmatprep.subr.mxu0 %v2219_v0  ;;  %v90_v1 = vld [vmem:[%s2216_s1 + $0x78] sm:$0xff]  ;;  %v89_v2 = vld [vmem:[%s2216_s1 + $0x70] sm:$0xff]  ;;  %914 = vmatprep.subr.mxu1 %v2219_v0  ;;  %v88_v3 = vld [vmem:[%s2216_s1 + $0x68] sm:$0xff] }
   0x2   :  { %108 = vmatpush1.msra.mxu0 %v90_v1  ;;  %946 = vmatpush1.msra.mxu1 %v90_v1  ;;  %v1034_v4 = vld [vmem:[%s2216_s1 + $0x60] sm:$0xff]  ;;  %v1041_v5 = vld [vmem:[%s2216_s1 + $0x58] sm:$0xff]  ;;  %v1050_v6 = vld [vmem:[%s2216_s1 + $0x50] sm:$0xff] }
   0x3   :  { %109 = vmatprep.subr.mxu0 %v2219_v0  ;;  %915 = vmatprep.subr.mxu1 %v2219_v0  ;;  %2322 = vst [vmem:[#allocation2_spill] sm:$0xff] %v1034_v4  ;;  %2323 = vst [vmem:[#allocation3_spill] sm:$0xff] %v1041_v5  ;;  %v1059_v7 = vld [vmem:[%s2216_s1 + $0x48] sm:$0xff]  ;;  %v1068_v8 = vld [vmem:[%s2216_s1 + $0x40] sm:$0xff] }
   0x4   :  { %110 = vmatpush1.msra.mxu0 %v89_v2  ;;  %947 = vmatpush1.msra.mxu1 %v89_v2  ;;  %2324 = vst [vmem:[#allocation4_spill] sm:$0xff] %v1050_v6  ;;  %2325 = vst [vmem:[#allocation5_spill] sm:$0xff] %v1059_v7  ;;  %v1077_v9 = vld [vmem:[%s2216_s1 + $0x38] sm:$0xff]  ;;  %v1086_v10 = vld [vmem:[%s2216_s1 + $0x30] sm:$0xff] }
   0x5   :  { %111 = vmatprep.subr.mxu0 %v2219_v0  ;;  %916 = vmatprep.subr.mxu1 %v2219_v0  ;;  %2326 = vst [vmem:[#allocation6_spill] sm:$0xff] %v1068_v8  ;;  %2327 = vst [vmem:[#allocation7_spill] sm:$0xff] %v1077_v9  ;;  %v1095_v11 = vld [vmem:[%s2216_s1 + $0x28] sm:$0xff]  ;;  %v79_v12 = vld [vmem:[%s2216_s1 + $0x20] sm:$0xff] }
   0x6   :  { %112 = vmatpush1.msra.mxu0 %v88_v3  ;;  %948 = vmatpush1.msra.mxu1 %v88_v3  ;;  %2328 = vst [vmem:[#allocation8_spill] sm:$0xff] %v1086_v10  ;;  %2329 = vst [vmem:[#allocation9_spill] sm:$0xff] %v1095_v11  ;;  %v78_v13 = vld [vmem:[%s2216_s1 + $0x18] sm:$0xff]  ;;  %v77_v14 = vld [vmem:[%s2216_s1 + $0x10] sm:$0xff] }
   0x7   :  { %113 = vmatprep.subr.mxu0 %v2219_v0  ;;  %917 = vmatprep.subr.mxu1 %v2219_v0  ;;  %v76_v15 = vld [vmem:[%s2216_s1 + $0x8] sm:$0xff]  ;;  %v75_v16 = vld [vmem:[%s2216_s1] sm:$0xff]  ;;  %v106_v17 = vld [vmem:[%s2216_s1 + $0xf8] sm:$0xff] }
   0x8   :  { %114 = vmatpush1.msra.mxu0 %v1034_v4  ;;  %949 = vmatpush1.msra.mxu1 %v1034_v4  ;;  %v1135_v18 = vld [vmem:[%s2217_s0 + $0x8] sm:$0xff]  ;;  %v105_v19 = vld [vmem:[%s2216_s1 + $0xf0] sm:$0xff]  ;;  %v1152_v21 = vld [vmem:[%s2216_s1 + $0xe0] sm:$0xff] }
   0x9   :  { %115 = vmatprep.subr.mxu0 %v2219_v0  ;;  %918 = vmatprep.subr.mxu1 %v2219_v0  ;;  %v104_v20 = vld [vmem:[%s2216_s1 + $0xe8] sm:$0xff]  ;;  %2330 = vst [vmem:[#allocation10_spill] sm:$0xff] %v1152_v21  ;;  %v1159_v22 = vld [vmem:[%s2216_s1 + $0xd8] sm:$0xff]  ;;  %v1167_v23 = vld [vmem:[%s2216_s1 + $0xd0] sm:$0xff] }
   0xa   :  { %116 = vmatpush1.msra.mxu0 %v1041_v5  ;;  %950 = vmatpush1.msra.mxu1 %v1041_v5  ;;  %2331 = vst [vmem:[#allocation11_spill] sm:$0xff] %v1159_v22  ;;  %2332 = vst [vmem:[#allocation12_spill] sm:$0xff] %v1167_v23  ;;  %v100_v24 = vld [vmem:[%s2216_s1 + $0xc8] sm:$0xff]  ;;  %v99_v25 = vld [vmem:[%s2216_s1 + $0xc0] sm:$0xff] }
   0xb   :  { %117 = vmatprep.subr.mxu0 %v2219_v0  ;;  %919 = vmatprep.subr.mxu1 %v2219_v0  ;;  %v98_v26 = vld [vmem:[%s2216_s1 + $0xb8] sm:$0xff]  ;;  %v97_v27 = vld [vmem:[%s2216_s1 + $0xb0] sm:$0xff]  ;;  %v96_v28 = vld [vmem:[%s2216_s1 + $0xa8] sm:$0xff] }
   0xc   :  { %118 = vmatpush1.msra.mxu0 %v1050_v6  ;;  %951 = vmatpush1.msra.mxu1 %v1050_v6  ;;  %v95_v29 = vld [vmem:[%s2216_s1 + $0xa0] sm:$0xff]  ;;  %v94_v30 = vld [vmem:[%s2216_s1 + $0x98] sm:$0xff]  ;;  %v93_v31 = vld [vmem:[%s2216_s1 + $0x90] sm:$0xff] }
   0xd   :  { %119 = vmatprep.subr.mxu0 %v2219_v0  ;;  %920 = vmatprep.subr.mxu1 %v2219_v0  ;;  %v92_v32 = vld [vmem:[%s2216_s1 + $0x88] sm:$0xff]  ;;  %v91_v33 = vld [vmem:[%s2216_s1 + $0x80] sm:$0xff]  ;;  %v1234_v35 = vld [vmem:[%s2217_s0 + $0x18] sm:$0xff] }
   0xe   :  { %120 = vmatpush1.msra.mxu0 %v1059_v7  ;;  %952 = vmatpush1.msra.mxu1 %v1059_v7  ;;  %v1227_v34 = vld [vmem:[%s2217_s0] sm:$0xff]  ;;  %v1239_v36 = vld [vmem:[%s2217_s0 + $0x108] sm:$0xff]  ;;  %v1251_v38 = vld [vmem:[%s2217_s0 + $0x118] sm:$0xff] }
   0xf   :  { %121 = vmatprep.subr.mxu0 %v2219_v0  ;;  %921 = vmatprep.subr.mxu1 %v2219_v0  ;;  %2333 = vst [vmem:[#allocation13_spill] sm:$0xff] %v1239_v36  ;;  %v1245_v37 = vld [vmem:[%s2217_s0 + $0x100] sm:$0xff]  ;;  %2335 = vst [vmem:[#allocation15_spill] sm:$0xff] %v1251_v38  ;;  %v1257_v39 = vld [vmem:[%s2217_s0 + $0x10] sm:$0xff] }
  0x10   :  { %122 = vmatpush1.msra.mxu0 %v1068_v8  ;;  %953 = vmatpush1.msra.mxu1 %v1068_v8  ;;  %2334 = vst [vmem:[#allocation14_spill] sm:$0xff] %v1245_v37  ;;  %v1263_v40 = vld [vmem:[%s2217_s0 + $0x28] sm:$0xff]  ;;  %v1271_v41 = vld [vmem:[%s2217_s0 + $0x110] sm:$0xff]  ;;  %v1284_v43 = vld [vmem:[%s2217_s0 + $0x20] sm:$0xff] }
  0x11   :  { %123 = vmatprep.subr.mxu0 %v2219_v0  ;;  %922 = vmatprep.subr.mxu1 %v2219_v0  ;;  %2336 = vst [vmem:[#allocation16_spill] sm:$0xff] %v1271_v41  ;;  %v1278_v42 = vld [vmem:[%s2217_s0 + $0x128] sm:$0xff]  ;;  %v1289_v44 = vld [vmem:[%s2217_s0 + $0x38] sm:$0xff]  ;;  %v1296_v45 = vld [vmem:[%s2217_s0 + $0x120] sm:$0xff] }
  0x12   :  { %124 = vmatpush1.msra.mxu0 %v1077_v9  ;;  %954 = vmatpush1.msra.mxu1 %v1077_v9  ;;  %2337 = vst [vmem:[#allocation17_spill] sm:$0xff] %v1278_v42  ;;  %2338 = vst [vmem:[#allocation18_spill] sm:$0xff] %v1296_v45  ;;  %v1302_v46 = vld [vmem:[%s2217_s0 + $0x138] sm:$0xff]  ;;  %v1308_v47 = vld [vmem:[%s2217_s0 + $0x30] sm:$0xff] }
  0x13   :  { %125 = vmatprep.subr.mxu0 %v2219_v0  ;;  %923 = vmatprep.subr.mxu1 %v2219_v0  ;;  %2339 = vst [vmem:[#allocation19_spill] sm:$0xff] %v1302_v46  ;;  %v1313_v48 = vld [vmem:[%s2217_s0 + $0x48] sm:$0xff]  ;;  %v1320_v49 = vld [vmem:[%s2217_s0 + $0x130] sm:$0xff]  ;;  %v1332_v51 = vld [vmem:[%s2217_s0 + $0x40] sm:$0xff] }
  0x14   :  { %126 = vmatpush1.msra.mxu0 %v1086_v10  ;;  %955 = vmatpush1.msra.mxu1 %v1086_v10  ;;  %2340 = vst [vmem:[#allocation20_spill] sm:$0xff] %v1320_v49  ;;  %v1326_v50 = vld [vmem:[%s2217_s0 + $0x148] sm:$0xff]  ;;  %v1337_v52 = vld [vmem:[%s2217_s0 + $0x58] sm:$0xff]  ;;  %v1344_v53 = vld [vmem:[%s2217_s0 + $0x140] sm:$0xff] }
  0x15   :  { %127 = vmatprep.subr.mxu0 %v2219_v0  ;;  %924 = vmatprep.subr.mxu1 %v2219_v0  ;;  %2341 = vst [vmem:[#allocation21_spill] sm:$0xff] %v1326_v50  ;;  %2342 = vst [vmem:[#allocation22_spill] sm:$0xff] %v1344_v53  ;;  %v1350_v54 = vld [vmem:[%s2217_s0 + $0x158] sm:$0xff]  ;;  %v1356_v55 = vld [vmem:[%s2217_s0 + $0x50] sm:$0xff] }
  0x16   :  { %128 = vmatpush1.msra.mxu0 %v1095_v11  ;;  %956 = vmatpush1.msra.mxu1 %v1095_v11  ;;  %2343 = vst [vmem:[#allocation23_spill] sm:$0xff] %v1350_v54  ;;  %v1361_v56 = vld [vmem:[%s2217_s0 + $0x68] sm:$0xff]  ;;  %v1368_v57 = vld [vmem:[%s2217_s0 + $0x150] sm:$0xff]  ;;  %v1380_v59 = vld [vmem:[%s2217_s0 + $0x60] sm:$0xff] }
  0x17   :  { %129 = vmatprep.subr.mxu0 %v2219_v0  ;;  %925 = vmatprep.subr.mxu1 %v2219_v0  ;;  %2344 = vst [vmem:[#allocation24_spill] sm:$0xff] %v1368_v57  ;;  %v1374_v58 = vld [vmem:[%s2217_s0 + $0x168] sm:$0xff]  ;;  %v1385_v60 = vld [vmem:[%s2217_s0 + $0x78] sm:$0xff]  ;;  %v1392_v61 = vld [vmem:[%s2217_s0 + $0x160] sm:$0xff] }
  0x18   :  { %130 = vmatpush1.msra.mxu0 %v79_v12  ;;  %957 = vmatpush1.msra.mxu1 %v79_v12  ;;  %2345 = vst [vmem:[#allocation25_spill] sm:$0xff] %v1374_v58  ;;  %2346 = vst [vmem:[#allocation26_spill] sm:$0xff] %v1392_v61  ;;  %v1398_v62 = vld [vmem:[%s2217_s0 + $0x178] sm:$0xff]  ;;  %v1404_v63 = vld [vmem:[%s2217_s0 + $0x70] sm:$0xff] }
  0x19   :  { %131 = vmatprep.subr.mxu0 %v2219_v0  ;;  %926 = vmatprep.subr.mxu1 %v2219_v0  ;;  %2347 = vst [vmem:[#allocation27_spill] sm:$0xff] %v1398_v62  ;;  %v1409_v1 = vld [vmem:[%s2217_s0 + $0x88] sm:$0xff]  ;;  %v1416_v2 = vld [vmem:[%s2217_s0 + $0x170] sm:$0xff]  ;;  %v1428_v12 = vld [vmem:[%s2217_s0 + $0x80] sm:$0xff] }
  0x1a   :  { %132 = vmatpush1.msra.mxu0 %v78_v13  ;;  %958 = vmatpush1.msra.mxu1 %v78_v13  ;;  %2348 = vst [vmem:[#allocation28_spill] sm:$0xff] %v1416_v2  ;;  %v1422_v3 = vld [vmem:[%s2217_s0 + $0x188] sm:$0xff]  ;;  %v1433_v13 = vld [vmem:[%s2217_s0 + $0x98] sm:$0xff]  ;;  %v1560_v4 = vld [vmem:[%s2217_s0 + $0x1d0] sm:$0xff] }
  0x1b   :  { %133 = vmatprep.subr.mxu0 %v2219_v0  ;;  %927 = vmatprep.subr.mxu1 %v2219_v0  ;;  %2349 = vst [vmem:[#allocation29_spill] sm:$0xff] %v1422_v3  ;;  %2363 = vst [vmem:[#allocation43_spill] sm:$0xff] %v1560_v4  ;;  %v1566_v5 = vld [vmem:[%s2217_s0 + $0x1e8] sm:$0xff]  ;;  %v1572_v6 = vld [vmem:[%s2217_s0 + $0xe0] sm:$0xff] }
  0x1c   :  { %134 = vmatpush1.msra.mxu0 %v77_v14  ;;  %959 = vmatpush1.msra.mxu1 %v77_v14  ;;  %v1440_v14 = vld [vmem:[%s2217_s0 + $0x180] sm:$0xff]  ;;  %2364 = vst [vmem:[#allocation44_spill] sm:$0xff] %v1566_v5  ;;  %2365 = vst [vmem:[#allocation45_spill] sm:$0xff] %v1572_v6  ;;  %v1577_v7 = vld [vmem:[%s2217_s0 + $0xf8] sm:$0xff] }
  0x1d   :  { %135 = vmatprep.subr.mxu0 %v2219_v0  ;;  %928 = vmatprep.subr.mxu1 %v2219_v0  ;;  %2350 = vst [vmem:[#allocation30_spill] sm:$0xff] %v1440_v14  ;;  %2366 = vst [vmem:[#allocation46_spill] sm:$0xff] %v1577_v7  ;;  %v1584_v8 = vld [vmem:[%s2217_s0 + $0x1e0] sm:$0xff]  ;;  %v1590_v9 = vld [vmem:[%s2217_s0 + $0x1f8] sm:$0xff] }
  0x1e   :  { %136 = vmatpush1.msra.mxu0 %v76_v15  ;;  %960 = vmatpush1.msra.mxu1 %v76_v15  ;;  %v1446_v15 = vld [vmem:[%s2217_s0 + $0x198] sm:$0xff]  ;;  %2367 = vst [vmem:[#allocation47_spill] sm:$0xff] %v1584_v8  ;;  %2368 = vst [vmem:[#allocation48_spill] sm:$0xff] %v1590_v9  ;;  %v1596_v10 = vld [vmem:[%s2217_s0 + $0xf0] sm:$0xff] }
  0x1f   :  { %137 = vmatprep.subr.mxu0 %v2219_v0  ;;  %929 = vmatprep.subr.mxu1 %v2219_v0  ;;  %2351 = vst [vmem:[#allocation31_spill] sm:$0xff] %v1446_v15  ;;  %2369 = vst [vmem:[#allocation49_spill] sm:$0xff] %v1596_v10  ;;  %v1603_v11 = vld [vmem:[%s2217_s0 + $0x1f0] sm:$0xff] }
  0x20   :  { %138 = vmatpush1.msra.mxu0 %v75_v16  ;;  %961 = vmatpush1.msra.mxu1 %v75_v16  ;;  %v1452_v16 = vld [vmem:[%s2217_s0 + $0x90] sm:$0xff]  ;;  %2370 = vst [vmem:[#allocation50_spill] sm:$0xff] %v1603_v11 }
  0x21   :  { %139 = vmatprep.subr.mxu0 %v2219_v0  ;;  %930 = vmatprep.subr.mxu1 %v2219_v0 }
  0x22   :  { %140 = vmatpush2.msra.mxu0 %v106_v17  ;;  %962 = vmatpush2.msra.mxu1 %v106_v17  ;;  %v1457_v17 = vld [vmem:[%s2217_s0 + $0xa8] sm:$0xff] }
  0x23   :  { %141 = vmatprep.subr.mxu0 %v2219_v0  ;;  %171 = vmatprep.mubr.f32.mxu0 %v1135_v18 }
  0x24   :  { %142 = vmatpush2.msra.mxu0 %v105_v19  ;;  %931 = vmatprep.subr.mxu1 %v2219_v0 }
  0x25   :  { %143 = vmatprep.subr.mxu0 %v2219_v0  ;;  %963 = vmatpush2.msra.mxu1 %v105_v19  ;;  %v1464_v19 = vld [vmem:[%s2217_s0 + $0x190] sm:$0xff] }
  0x26   :  { %144 = vmatpush2.msra.mxu0 %v104_v20  ;;  %932 = vmatprep.subr.mxu1 %v2219_v0  ;;  %2352 = vst [vmem:[#allocation32_spill] sm:$0xff] %v1464_v19 }
  0x27   :  { %145 = vmatprep.subr.mxu0 %v2219_v0  ;;  %964 = vmatpush2.msra.mxu1 %v104_v20  ;;  %v1470_v20 = vld [vmem:[%s2217_s0 + $0x1a8] sm:$0xff] }
  0x28   :  { %146 = vmatpush2.msra.mxu0 %v1152_v21  ;;  %933 = vmatprep.subr.mxu1 %v2219_v0  ;;  %2353 = vst [vmem:[#allocation33_spill] sm:$0xff] %v1470_v20 }
  0x29   :  { %147 = vmatprep.subr.mxu0 %v2219_v0  ;;  %965 = vmatpush2.msra.mxu1 %v1152_v21  ;;  %v1542_v21 = vld [vmem:[%s2217_s0 + $0x1d8] sm:$0xff] }
  0x2a   :  { %148 = vmatpush2.msra.mxu0 %v1159_v22  ;;  %934 = vmatprep.subr.mxu1 %v2219_v0  ;;  %2360 = vst [vmem:[#allocation40_spill] sm:$0xff] %v1542_v21 }
  0x2b   :  { %149 = vmatprep.subr.mxu0 %v2219_v0  ;;  %966 = vmatpush2.msra.mxu1 %v1159_v22  ;;  %v1548_v22 = vld [vmem:[%s2217_s0 + $0xd0] sm:$0xff] }
  0x2c   :  { %150 = vmatpush2.msra.mxu0 %v1167_v23  ;;  %935 = vmatprep.subr.mxu1 %v2219_v0  ;;  %2361 = vst [vmem:[#allocation41_spill] sm:$0xff] %v1548_v22 }
  0x2d   :  { %151 = vmatprep.subr.mxu0 %v2219_v0  ;;  %967 = vmatpush2.msra.mxu1 %v1167_v23  ;;  %v1553_v23 = vld [vmem:[%s2217_s0 + $0xe8] sm:$0xff] }
  0x2e   :  { %152 = vmatpush2.msra.mxu0 %v100_v24  ;;  %936 = vmatprep.subr.mxu1 %v2219_v0  ;;  %2362 = vst [vmem:[#allocation42_spill] sm:$0xff] %v1553_v23 }
  0x2f   :  { %153 = vmatprep.subr.mxu0 %v2219_v0  ;;  %968 = vmatpush2.msra.mxu1 %v100_v24  ;;  %v1476_v24 = vld [vmem:[%s2217_s0 + $0xa0] sm:$0xff] }
  0x30   :  { %154 = vmatpush2.msra.mxu0 %v99_v25  ;;  %937 = vmatprep.subr.mxu1 %v2219_v0 }
  0x31   :  { %155 = vmatprep.subr.mxu0 %v2219_v0  ;;  %969 = vmatpush2.msra.mxu1 %v99_v25  ;;  %v1481_v25 = vld [vmem:[%s2217_s0 + $0xb8] sm:$0xff] }
  0x32   :  { %156 = vmatpush2.msra.mxu0 %v98_v26  ;;  %938 = vmatprep.subr.mxu1 %v2219_v0 }
  0x33   :  { %157 = vmatprep.subr.mxu0 %v2219_v0  ;;  %970 = vmatpush2.msra.mxu1 %v98_v26  ;;  %v1488_v26 = vld [vmem:[%s2217_s0 + $0x1a0] sm:$0xff] }
  0x34   :  { %158 = vmatpush2.msra.mxu0 %v97_v27  ;;  %939 = vmatprep.subr.mxu1 %v2219_v0  ;;  %2354 = vst [vmem:[#allocation34_spill] sm:$0xff] %v1488_v26 }
  0x35   :  { %159 = vmatprep.subr.mxu0 %v2219_v0  ;;  %971 = vmatpush2.msra.mxu1 %v97_v27  ;;  %v1494_v27 = vld [vmem:[%s2217_s0 + $0x1b8] sm:$0xff] }
  0x36   :  { %160 = vmatpush2.msra.mxu0 %v96_v28  ;;  %940 = vmatprep.subr.mxu1 %v2219_v0  ;;  %2355 = vst [vmem:[#allocation35_spill] sm:$0xff] %v1494_v27 }
  0x37   :  { %161 = vmatprep.subr.mxu0 %v2219_v0  ;;  %972 = vmatpush2.msra.mxu1 %v96_v28  ;;  %v1500_v28 = vld [vmem:[%s2217_s0 + $0xb0] sm:$0xff] }
  0x38   :  { %162 = vmatpush2.msra.mxu0 %v95_v29  ;;  %941 = vmatprep.subr.mxu1 %v2219_v0 }
  0x39   :  { %163 = vmatprep.subr.mxu0 %v2219_v0  ;;  %973 = vmatpush2.msra.mxu1 %v95_v29  ;;  %v1505_v29 = vld [vmem:[%s2217_s0 + $0xc8] sm:$0xff] }
  0x3a   :  { %164 = vmatpush2.msra.mxu0 %v94_v30  ;;  %942 = vmatprep.subr.mxu1 %v2219_v0 }
  0x3b   :  { %165 = vmatprep.subr.mxu0 %v2219_v0  ;;  %974 = vmatpush2.msra.mxu1 %v94_v30  ;;  %v1512_v30 = vld [vmem:[%s2217_s0 + $0x1b0] sm:$0xff] }
  0x3c   :  { %166 = vmatpush2.msra.mxu0 %v93_v31  ;;  %943 = vmatprep.subr.mxu1 %v2219_v0  ;;  %2356 = vst [vmem:[#allocation36_spill] sm:$0xff] %v1512_v30 }
  0x3d   :  { %167 = vmatprep.subr.mxu0 %v2219_v0  ;;  %975 = vmatpush2.msra.mxu1 %v93_v31  ;;  %v1518_v31 = vld [vmem:[%s2217_s0 + $0x1c8] sm:$0xff] }
  0x3e   :  { %168 = vmatpush2.msra.mxu0 %v92_v32  ;;  %944 = vmatprep.subr.mxu1 %v2219_v0  ;;  %2357 = vst [vmem:[#allocation37_spill] sm:$0xff] %v1518_v31 }
  0x3f   :  { %169 = vmatprep.subr.mxu0 %v2219_v0  ;;  %976 = vmatpush2.msra.mxu1 %v92_v32  ;;  %v1524_v32 = vld [vmem:[%s2217_s0 + $0xc0] sm:$0xff] }
  0x40   :  { %170 = vmatpush2.msra.mxu0 %v91_v33  ;;  %945 = vmatprep.subr.mxu1 %v2219_v0 }
  0x41   :  { %172 = vmatmul.mubr.f32.vlgmr.msra.gmra.mxu0 %v1227_v34  ;;  %977 = vmatpush2.msra.mxu1 %v91_v33  ;;  %v1529_v33 = vld [vmem:[%s2217_s0 + $0xd8] sm:$0xff] }
  0x42   :  { %176 = vmatprep.mubr.f32.mxu0 %v1234_v35  ;;  %251 = vmatprep.mubr.f32.mxu1 %v1239_v36  ;;  %2358 = vst [vmem:[#allocation38_spill] sm:$0xff] %v1529_v33 }
  0x43   :  { %252 = vmatmul.mubr.f32.vlgmr.msra.gmra.mxu1 %v1245_v37  ;;  %364 = vmatprep.subr.mxu1 %v2219_v0 }
  0x44   :  { %256 = vmatprep.mubr.f32.mxu1 %v1251_v38  ;;  %621 = vmatprep.subr.mxu0 %v2219_v0  ;;  %v1536_v0 = vld [vmem:[%s2217_s0 + $0x1c0] sm:$0xff] }
  0x45   :  { %177 = vmatmul.mubr.f32.gmra.mxu0 %v1257_v39  ;;  %2359 = vst [vmem:[#allocation39_spill] sm:$0xff] %v1536_v0 }
  0x46   :  { %181 = vmatprep.mubr.f32.mxu0 %v1263_v40 }
  0x47   :  { %257 = vmatmul.mubr.f32.gmra.mxu1 %v1271_v41 }
  0x48   :  { %261 = vmatprep.mubr.f32.mxu1 %v1278_v42 }
  0x49   :  { %182 = vmatmul.mubr.f32.gmra.mxu0 %v1284_v43 }
  0x4a   :  { %186 = vmatprep.mubr.f32.mxu0 %v1289_v44 }
  0x4b   :  { %262 = vmatmul.mubr.f32.gmra.mxu1 %v1296_v45 }
  0x4c   :  { %266 = vmatprep.mubr.f32.mxu1 %v1302_v46 }
  0x4d   :  { %187 = vmatmul.mubr.f32.gmra.mxu0 %v1308_v47 }
  0x4e   :  { %191 = vmatprep.mubr.f32.mxu0 %v1313_v48 }
  0x4f   :  { %267 = vmatmul.mubr.f32.gmra.mxu1 %v1320_v49 }
  0x50   :  { %271 = vmatprep.mubr.f32.mxu1 %v1326_v50 }
  0x51   :  { %192 = vmatmul.mubr.f32.gmra.mxu0 %v1332_v51 }
  0x52   :  { %196 = vmatprep.mubr.f32.mxu0 %v1337_v52 }
  0x53   :  { %272 = vmatmul.mubr.f32.gmra.mxu1 %v1344_v53 }
  0x54   :  { %276 = vmatprep.mubr.f32.mxu1 %v1350_v54 }
  0x55   :  { %197 = vmatmul.mubr.f32.gmra.mxu0 %v1356_v55 }
  0x56   :  { %201 = vmatprep.mubr.f32.mxu0 %v1361_v56 }
  0x57   :  { %277 = vmatmul.mubr.f32.gmra.mxu1 %v1368_v57 }
  0x58   :  { %281 = vmatprep.mubr.f32.mxu1 %v1374_v58 }
  0x59   :  { %202 = vmatmul.mubr.f32.gmra.mxu0 %v1380_v59 }
  0x5a   :  { %206 = vmatprep.mubr.f32.mxu0 %v1385_v60 }
  0x5b   :  { %282 = vmatmul.mubr.f32.gmra.mxu1 %v1392_v61 }
  0x5c   :  { %286 = vmatprep.mubr.f32.mxu1 %v1398_v62 }
  0x5d   :  { %207 = vmatmul.mubr.f32.gmra.mxu0 %v1404_v63 }
  0x5e   :  { %211 = vmatprep.mubr.f32.mxu0 %v1409_v1 }
  0x5f   :  { %287 = vmatmul.mubr.f32.gmra.mxu1 %v1416_v2 }
  0x60   :  { %291 = vmatprep.mubr.f32.mxu1 %v1422_v3 }
  0x61   :  { %212 = vmatmul.mubr.f32.gmra.mxu0 %v1428_v12 }
  0x62   :  { %216 = vmatprep.mubr.f32.mxu0 %v1433_v13 }
  0x63   :  { %292 = vmatmul.mubr.f32.gmra.mxu1 %v1440_v14 }
  0x64   :  { %296 = vmatprep.mubr.f32.mxu1 %v1446_v15 }
  0x65   :  { %217 = vmatmul.mubr.f32.gmra.mxu0 %v1452_v16 }
  0x66   :  { %221 = vmatprep.mubr.f32.mxu0 %v1457_v17 }
  0x67   :  { %297 = vmatmul.mubr.f32.gmra.mxu1 %v1464_v19 }
  0x68   :  { %301 = vmatprep.mubr.f32.mxu1 %v1470_v20 }
  0x69   :  { %222 = vmatmul.mubr.f32.gmra.mxu0 %v1476_v24 }
  0x6a   :  { %226 = vmatprep.mubr.f32.mxu0 %v1481_v25 }
  0x6b   :  { %302 = vmatmul.mubr.f32.gmra.mxu1 %v1488_v26 }
  0x6c   :  { %306 = vmatprep.mubr.f32.mxu1 %v1494_v27 }
  0x6d   :  { %227 = vmatmul.mubr.f32.gmra.mxu0 %v1500_v28 }
  0x6e   :  { %231 = vmatprep.mubr.f32.mxu0 %v1505_v29 }
  0x6f   :  { %307 = vmatmul.mubr.f32.gmra.mxu1 %v1512_v30 }
  0x70   :  { %311 = vmatprep.mubr.f32.mxu1 %v1518_v31 }
  0x71   :  { %232 = vmatmul.mubr.f32.gmra.mxu0 %v1524_v32 }
  0x72   :  { %236 = vmatprep.mubr.f32.mxu0 %v1529_v33 }
  0x73   :  { %312 = vmatmul.mubr.f32.gmra.mxu1 %v1536_v0 }
  0x74   :  { %316 = vmatprep.mubr.f32.mxu1 %v1542_v21 }
  0x75   :  { %237 = vmatmul.mubr.f32.gmra.mxu0 %v1548_v22 }
  0x76   :  { %241 = vmatprep.mubr.f32.mxu0 %v1553_v23 }
  0x77   :  { %317 = vmatmul.mubr.f32.gmra.mxu1 %v1560_v4 }
  0x78   :  { %321 = vmatprep.mubr.f32.mxu1 %v1566_v5 }
  0x79   :  { %242 = vmatmul.mubr.f32.gmra.mxu0 %v1572_v6 }
  0x7a   :  { %246 = vmatprep.mubr.f32.mxu0 %v1577_v7 }
  0x7b   :  { %322 = vmatmul.mubr.f32.gmra.mxu1 %v1584_v8 }
  0x7c   :  { %326 = vmatprep.mubr.f32.mxu1 %v1590_v9 }
  0x7d   :  { %247 = vmatmul.mubr.f32.gmra.mxu0 %v1596_v10 }
  0x7e   :  { %685 = vmatprep.mubr.f32.mxu0 %v1135_v18 }
  0x7f   :  { %327 = vmatmul.mubr.f32.gmra.mxu1 %v1603_v11 }
  0x80   :  { %428 = vmatprep.mubr.f32.mxu1 %v1135_v18 }
 0x101   :  { %v1609_v5 = vpop.f32.mrf.mxu0 }
 0x102   :  { %2371 = vst [vmem:[#allocation51_spill] sm:$0xff] %v1609_v5 }
 0x103   :  { %v175_v4 = vpop.f32.mrf.mxu0  ;;  %v1611_v21 = vpop.f32.mrf.mxu1 }
 0x104   :  { %2372 = vst [vmem:[#allocation52_spill] sm:$0xff] %v1611_v21 }
 0x105   :  { %v1613_v8 = vpop.f32.mrf.mxu0  ;;  %v255_v9 = vpop.f32.mrf.mxu1 }
 0x106   :  { %2373 = vst [vmem:[#allocation53_spill] sm:$0xff] %v1613_v8 }
 0x107   :  { %v180_v0 = vpop.f32.mrf.mxu0  ;;  %v1615_v31 = vpop.f32.mrf.mxu1 }
 0x108   :  { %2374 = vst [vmem:[#allocation54_spill] sm:$0xff] %v1615_v31 }
 0x109   :  { %v1617_v30 = vpop.f32.mrf.mxu0  ;;  %v260_v27 = vpop.f32.mrf.mxu1 }
 0x10a   :  { %2375 = vst [vmem:[#allocation55_spill] sm:$0xff] %v1617_v30 }
 0x10b   :  { %v185_v26 = vpop.f32.mrf.mxu0  ;;  %v1619_v20 = vpop.f32.mrf.mxu1 }
 0x10c   :  { %2376 = vst [vmem:[#allocation56_spill] sm:$0xff] %v1619_v20 }
 0x10d   :  { %v1621_v11 = vpop.f32.mrf.mxu0  ;;  %v265_v18 = vpop.f32.mrf.mxu1 }
 0x10e   :  { %2377 = vst [vmem:[#allocation57_spill] sm:$0xff] %v1621_v11 }
 0x10f   :  { %v190_v19 = vpop.f32.mrf.mxu0  ;;  %v1623_v15 = vpop.f32.mrf.mxu1 }
 0x110   :  { %2378 = vst [vmem:[#allocation58_spill] sm:$0xff] %v1623_v15 }
 0x111   :  { %v1625_v4 = vpop.f32.mrf.mxu0  ;;  %v270_v14 = vpop.f32.mrf.mxu1 }
 0x112   :  { %2379 = vst [vmem:[#allocation59_spill] sm:$0xff] %v1625_v4 }
 0x113   :  { %v195_v3 = vpop.f32.mrf.mxu0  ;;  %v1627_v9 = vpop.f32.mrf.mxu1 }
 0x114   :  { %2380 = vst [vmem:[#allocation60_spill] sm:$0xff] %v1627_v9 }
 0x115   :  { %v1629_v0 = vpop.f32.mrf.mxu0  ;;  %v275_v2 = vpop.f32.mrf.mxu1 }
 0x117   :  { %v200_v62 = vpop.f32.mrf.mxu0  ;;  %v1631_v27 = vpop.f32.mrf.mxu1 }
 0x118   :  { %2381 = vst [vmem:[#allocation61_spill] sm:$0xff] %v1631_v27 }
 0x119   :  { %v1633_v26 = vpop.f32.mrf.mxu0  ;;  %v280_v61 = vpop.f32.mrf.mxu1 }
 0x11b   :  { %v205_v58 = vpop.f32.mrf.mxu0  ;;  %v1635_v18 = vpop.f32.mrf.mxu1 }
 0x11c   :  { %2382 = vst [vmem:[#allocation62_spill] sm:$0xff] %v1635_v18 }
 0x11d   :  { %v1637_v19 = vpop.f32.mrf.mxu0  ;;  %v285_v57 = vpop.f32.mrf.mxu1 }
 0x11f   :  { %v210_v54 = vpop.f32.mrf.mxu0  ;;  %v1639_v14 = vpop.f32.mrf.mxu1 }
 0x120   :  { %2383 = vst [vmem:[#allocation63_spill] sm:$0xff] %v1639_v14 }
 0x121   :  { %v1641_v3 = vpop.f32.mrf.mxu0  ;;  %v290_v53 = vpop.f32.mrf.mxu1 }
 0x123   :  { %v215_v50 = vpop.f32.mrf.mxu0  ;;  %v1643_v2 = vpop.f32.mrf.mxu1 }
 0x124   :  { %2384 = vst [vmem:[#allocation64_spill] sm:$0xff] %v1643_v2 }
 0x125   :  { %v1645_v62 = vpop.f32.mrf.mxu0  ;;  %v295_v49 = vpop.f32.mrf.mxu1 }
 0x127   :  { %v220_v46 = vpop.f32.mrf.mxu0  ;;  %v1647_v61 = vpop.f32.mrf.mxu1 }
 0x128   :  { %2385 = vst [vmem:[#allocation65_spill] sm:$0xff] %v1647_v61 }
 0x129   :  { %v1649_v58 = vpop.f32.mrf.mxu0  ;;  %v300_v45 = vpop.f32.mrf.mxu1 }
 0x12b   :  { %v225_v42 = vpop.f32.mrf.mxu0  ;;  %v1651_v57 = vpop.f32.mrf.mxu1 }
 0x12d   :  { %v1653_v54 = vpop.f32.mrf.mxu0  ;;  %v305_v41 = vpop.f32.mrf.mxu1 }
 0x12f   :  { %v230_v38 = vpop.f32.mrf.mxu0  ;;  %v1655_v53 = vpop.f32.mrf.mxu1 }
 0x131   :  { %v1657_v50 = vpop.f32.mrf.mxu0  ;;  %v310_v37 = vpop.f32.mrf.mxu1 }
 0x132   :  { %v2386_v37 = vmov 0.0  }
 0x133   :  { %v235_v36 = vpop.f32.mrf.mxu0  ;;  %v1659_v49 = vpop.f32.mrf.mxu1 }
 0x135   :  { %v1661_v46 = vpop.f32.mrf.mxu0  ;;  %v315_v10 = vpop.f32.mrf.mxu1 }
 0x136   :  { %v2388_v10 = vld [vmem:[#allocation41_spill] sm:$0xff] }
 0x137   :  { %v240_v7 = vpop.f32.mrf.mxu0  ;;  %v1663_v45 = vpop.f32.mrf.mxu1 }
 0x139   :  { %v1665_v42 = vpop.f32.mrf.mxu0  ;;  %v320_v6 = vpop.f32.mrf.mxu1 }
 0x13a   :  { %v2387_v6 = vld [vmem:[#allocation38_spill] sm:$0xff] }
 0x13b   :  { %v245_v23 = vpop.f32.mrf.mxu0  ;;  %v1667_v41 = vpop.f32.mrf.mxu1 }
 0x13c   :  { %v2390_v23 = vld [vmem:[#allocation45_spill] sm:$0xff] }
 0x13d   :  { %v1669_v38 = vpop.f32.mrf.mxu0  ;;  %v325_v22 = vpop.f32.mrf.mxu1 }
 0x13e   :  { %365 = vmatpush1.msra.mxu1 %v1669_v38  ;;  %v2389_v22 = vld [vmem:[#allocation42_spill] sm:$0xff] }
 0x13f   :  { %v250_v36 = vpop.f32.mrf.mxu0  ;;  %366 = vmatprep.subr.mxu1 %v2386_v37  ;;  %v1673_v33 = vpop.f32.mrf.mxu1 }
 0x140   :  { %367 = vmatpush1.msra.mxu1 %v1665_v42  ;;  %v2391_v36 = vld [vmem:[#allocation46_spill] sm:$0xff] }
 0x141   :  { %368 = vmatprep.subr.mxu1 %v2386_v37  ;;  %v330_v7 = vpop.f32.mrf.mxu1 }
 0x142   :  { %369 = vmatpush1.msra.mxu1 %v1661_v46  ;;  %v2392_v7 = vld [vmem:[#allocation49_spill] sm:$0xff] }
 0x143   :  { %370 = vmatprep.subr.mxu1 %v2386_v37 }
 0x144   :  { %371 = vmatpush1.msra.mxu1 %v1657_v50 }
 0x145   :  { %372 = vmatprep.subr.mxu1 %v2386_v37 }
 0x146   :  { %373 = vmatpush1.msra.mxu1 %v1653_v54 }
 0x147   :  { %374 = vmatprep.subr.mxu1 %v2386_v37 }
 0x148   :  { %375 = vmatpush1.msra.mxu1 %v1649_v58 }
 0x149   :  { %376 = vmatprep.subr.mxu1 %v2386_v37 }
 0x14a   :  { %377 = vmatpush1.msra.mxu1 %v1645_v62 }
 0x14b   :  { %378 = vmatprep.subr.mxu1 %v2386_v37 }
 0x14c   :  { %379 = vmatpush1.msra.mxu1 %v1641_v3 }
 0x14d   :  { %380 = vmatprep.subr.mxu1 %v2386_v37 }
 0x14e   :  { %381 = vmatpush1.msra.mxu1 %v1637_v19 }
 0x14f   :  { %382 = vmatprep.subr.mxu1 %v2386_v37 }
 0x150   :  { %383 = vmatpush1.msra.mxu1 %v1633_v26 }
 0x151   :  { %384 = vmatprep.subr.mxu1 %v2386_v37 }
 0x152   :  { %385 = vmatpush1.msra.mxu1 %v1629_v0 }
 0x153   :  { %386 = vmatprep.subr.mxu1 %v2386_v37 }
 0x154   :  { %387 = vmatpush1.msra.mxu1 %v1625_v4  ;;  %v2403_v4 = vld [vmem:[#allocation23_spill] sm:$0xff] }
 0x155   :  { %388 = vmatprep.subr.mxu1 %v2386_v37 }
 0x156   :  { %389 = vmatpush1.msra.mxu1 %v1621_v11  ;;  %v2405_v11 = vld [vmem:[#allocation25_spill] sm:$0xff] }
 0x157   :  { %390 = vmatprep.subr.mxu1 %v2386_v37 }
 0x158   :  { %391 = vmatpush1.msra.mxu1 %v1617_v30  ;;  %v2406_v30 = vld [vmem:[#allocation26_spill] sm:$0xff] }
 0x159   :  { %392 = vmatprep.subr.mxu1 %v2386_v37 }
 0x15a   :  { %393 = vmatpush1.msra.mxu1 %v1613_v8  ;;  %v2407_v8 = vld [vmem:[#allocation27_spill] sm:$0xff] }
 0x15b   :  { %394 = vmatprep.subr.mxu1 %v2386_v37 }
 0x15c   :  { %395 = vmatpush1.msra.mxu1 %v1609_v5  ;;  %v2408_v5 = vld [vmem:[#allocation28_spill] sm:$0xff] }
 0x15d   :  { %396 = vmatprep.subr.mxu1 %v2386_v37 }
 0x15e   :  { %397 = vmatpush2.msra.mxu1 %v1673_v33 }
 0x15f   :  { %398 = vmatprep.subr.mxu1 %v2386_v37 }
 0x160   :  { %399 = vmatpush2.msra.mxu1 %v1667_v41 }
 0x161   :  { %400 = vmatprep.subr.mxu1 %v2386_v37 }
 0x162   :  { %401 = vmatpush2.msra.mxu1 %v1663_v45 }
 0x163   :  { %402 = vmatprep.subr.mxu1 %v2386_v37 }
 0x164   :  { %403 = vmatpush2.msra.mxu1 %v1659_v49 }
 0x165   :  { %404 = vmatprep.subr.mxu1 %v2386_v37 }
 0x166   :  { %405 = vmatpush2.msra.mxu1 %v1655_v53 }
 0x167   :  { %406 = vmatprep.subr.mxu1 %v2386_v37 }
 0x168   :  { %407 = vmatpush2.msra.mxu1 %v1651_v57 }
 0x169   :  { %408 = vmatprep.subr.mxu1 %v2386_v37 }
 0x16a   :  { %409 = vmatpush2.msra.mxu1 %v1647_v61  ;;  %v2393_v61 = vld [vmem:[#allocation13_spill] sm:$0xff] }
 0x16b   :  { %410 = vmatprep.subr.mxu1 %v2386_v37 }
 0x16c   :  { %411 = vmatpush2.msra.mxu1 %v1643_v2  ;;  %v2394_v2 = vld [vmem:[#allocation14_spill] sm:$0xff] }
 0x16d   :  { %412 = vmatprep.subr.mxu1 %v2386_v37 }
 0x16e   :  { %413 = vmatpush2.msra.mxu1 %v1639_v14  ;;  %v2395_v14 = vld [vmem:[#allocation15_spill] sm:$0xff] }
 0x16f   :  { %414 = vmatprep.subr.mxu1 %v2386_v37 }
 0x170   :  { %415 = vmatpush2.msra.mxu1 %v1635_v18  ;;  %v2396_v18 = vld [vmem:[#allocation16_spill] sm:$0xff] }
 0x171   :  { %416 = vmatprep.subr.mxu1 %v2386_v37 }
 0x172   :  { %417 = vmatpush2.msra.mxu1 %v1631_v27  ;;  %v2397_v27 = vld [vmem:[#allocation17_spill] sm:$0xff] }
 0x173   :  { %418 = vmatprep.subr.mxu1 %v2386_v37 }
 0x174   :  { %419 = vmatpush2.msra.mxu1 %v1627_v9  ;;  %v2398_v9 = vld [vmem:[#allocation18_spill] sm:$0xff] }
 0x175   :  { %420 = vmatprep.subr.mxu1 %v2386_v37 }
 0x176   :  { %421 = vmatpush2.msra.mxu1 %v1623_v15  ;;  %v2399_v15 = vld [vmem:[#allocation19_spill] sm:$0xff] }
 0x177   :  { %422 = vmatprep.subr.mxu1 %v2386_v37 }
 0x178   :  { %423 = vmatpush2.msra.mxu1 %v1619_v20  ;;  %v2400_v20 = vld [vmem:[#allocation20_spill] sm:$0xff] }
 0x179   :  { %424 = vmatprep.subr.mxu1 %v2386_v37 }
 0x17a   :  { %425 = vmatpush2.msra.mxu1 %v1615_v31  ;;  %v2401_v31 = vld [vmem:[#allocation21_spill] sm:$0xff] }
 0x17b   :  { %426 = vmatprep.subr.mxu1 %v2386_v37 }
 0x17c   :  { %427 = vmatpush2.msra.mxu1 %v1611_v21  ;;  %v2402_v21 = vld [vmem:[#allocation22_spill] sm:$0xff] }
 0x17d   :  { %429 = vmatmul.mubr.f32.vlgmr.msra.gmra.mxu1 %v1227_v34 }
 0x17e   :  { %433 = vmatprep.mubr.f32.mxu1 %v1234_v35 }
 0x181   :  { %434 = vmatmul.mubr.f32.gmra.mxu1 %v1257_v39 }
 0x182   :  { %438 = vmatprep.mubr.f32.mxu1 %v1263_v40 }
 0x185   :  { %439 = vmatmul.mubr.f32.gmra.mxu1 %v1284_v43 }
 0x186   :  { %443 = vmatprep.mubr.f32.mxu1 %v1289_v44 }
 0x189   :  { %444 = vmatmul.mubr.f32.gmra.mxu1 %v1308_v47 }
 0x18a   :  { %448 = vmatprep.mubr.f32.mxu1 %v1313_v48 }
 0x18d   :  { %449 = vmatmul.mubr.f32.gmra.mxu1 %v1332_v51 }
 0x18e   :  { %453 = vmatprep.mubr.f32.mxu1 %v1337_v52 }
 0x191   :  { %454 = vmatmul.mubr.f32.gmra.mxu1 %v1356_v55 }
 0x192   :  { %458 = vmatprep.mubr.f32.mxu1 %v1361_v56 }
 0x195   :  { %459 = vmatmul.mubr.f32.gmra.mxu1 %v1380_v59 }
 0x196   :  { %463 = vmatprep.mubr.f32.mxu1 %v1385_v60 }
 0x199   :  { %464 = vmatmul.mubr.f32.gmra.mxu1 %v1404_v63 }
 0x19a   :  { %468 = vmatprep.mubr.f32.mxu1 %v1409_v1 }
 0x19d   :  { %469 = vmatmul.mubr.f32.gmra.mxu1 %v1428_v12 }
 0x19e   :  { %473 = vmatprep.mubr.f32.mxu1 %v1433_v13 }
 0x1a1   :  { %474 = vmatmul.mubr.f32.gmra.mxu1 %v1452_v16 }
 0x1a2   :  { %478 = vmatprep.mubr.f32.mxu1 %v1457_v17 }
 0x1a5   :  { %479 = vmatmul.mubr.f32.gmra.mxu1 %v1476_v24 }
 0x1a6   :  { %483 = vmatprep.mubr.f32.mxu1 %v1481_v25 }
 0x1a9   :  { %484 = vmatmul.mubr.f32.gmra.mxu1 %v1500_v28 }
 0x1aa   :  { %488 = vmatprep.mubr.f32.mxu1 %v1505_v29 }
 0x1ad   :  { %489 = vmatmul.mubr.f32.gmra.mxu1 %v1524_v32 }
 0x1ae   :  { %493 = vmatprep.mubr.f32.mxu1 %v2387_v6  ;;  %v2434_v6 = vld [vmem:[#allocation4_spill] sm:$0xff] }
 0x1b1   :  { %494 = vmatmul.mubr.f32.gmra.mxu1 %v2388_v10 }
 0x1b2   :  { %498 = vmatprep.mubr.f32.mxu1 %v2389_v22  ;;  %v2431_v22 = vld [vmem:[#allocation6_spill] sm:$0xff] }
 0x1b5   :  { %499 = vmatmul.mubr.f32.gmra.mxu1 %v2390_v23 }
 0x1b6   :  { %503 = vmatprep.mubr.f32.mxu1 %v2391_v36  ;;  %v2429_v36 = vld [vmem:[#allocation7_spill] sm:$0xff] }
 0x1b9   :  { %504 = vmatmul.mubr.f32.gmra.mxu1 %v2392_v7 }
 0x1ba   :  { %508 = vmatprep.mubr.f32.mxu1 %v2393_v61  ;;  %v2404_v61 = vld [vmem:[#allocation24_spill] sm:$0xff] }
 0x1bd   :  { %509 = vmatmul.mubr.f32.gmra.mxu1 %v2394_v2  ;;  %v2427_v2 = vld [vmem:[#allocation8_spill] sm:$0xff] }
 0x1be   :  { %513 = vmatprep.mubr.f32.mxu1 %v2395_v14 }
 0x1c1   :  { %514 = vmatmul.mubr.f32.gmra.mxu1 %v2396_v18 }
 0x1c2   :  { %518 = vmatprep.mubr.f32.mxu1 %v2397_v27 }
 0x1c5   :  { %519 = vmatmul.mubr.f32.gmra.mxu1 %v2398_v9  ;;  %v2409_v9 = vld [vmem:[#allocation29_spill] sm:$0xff] }
 0x1c6   :  { %523 = vmatprep.mubr.f32.mxu1 %v2399_v15  ;;  %v2410_v15 = vld [vmem:[#allocation30_spill] sm:$0xff] }
 0x1c9   :  { %524 = vmatmul.mubr.f32.gmra.mxu1 %v2400_v20  ;;  %v2411_v20 = vld [vmem:[#allocation31_spill] sm:$0xff] }
 0x1ca   :  { %528 = vmatprep.mubr.f32.mxu1 %v2401_v31  ;;  %v2412_v31 = vld [vmem:[#allocation32_spill] sm:$0xff] }
 0x1cd   :  { %529 = vmatmul.mubr.f32.gmra.mxu1 %v2402_v21  ;;  %v2413_v21 = vld [vmem:[#allocation33_spill] sm:$0xff] }
 0x1ce   :  { %533 = vmatprep.mubr.f32.mxu1 %v2403_v4  ;;  %v2414_v4 = vld [vmem:[#allocation34_spill] sm:$0xff] }
 0x1d1   :  { %534 = vmatmul.mubr.f32.gmra.mxu1 %v2404_v61  ;;  %v2415_v61 = vld [vmem:[#allocation35_spill] sm:$0xff] }
 0x1d2   :  { %538 = vmatprep.mubr.f32.mxu1 %v2405_v11  ;;  %v2416_v11 = vld [vmem:[#allocation36_spill] sm:$0xff] }
 0x1d5   :  { %539 = vmatmul.mubr.f32.gmra.mxu1 %v2406_v30  ;;  %v2417_v30 = vld [vmem:[#allocation37_spill] sm:$0xff] }
 0x1d6   :  { %543 = vmatprep.mubr.f32.mxu1 %v2407_v8  ;;  %v2418_v8 = vld [vmem:[#allocation39_spill] sm:$0xff] }
 0x1d9   :  { %544 = vmatmul.mubr.f32.gmra.mxu1 %v2408_v5  ;;  %v2419_v5 = vld [vmem:[#allocation40_spill] sm:$0xff] }
 0x1da   :  { %548 = vmatprep.mubr.f32.mxu1 %v2409_v9  ;;  %v2420_v9 = vld [vmem:[#allocation43_spill] sm:$0xff] }
 0x1dd   :  { %549 = vmatmul.mubr.f32.gmra.mxu1 %v2410_v15  ;;  %v2421_v15 = vld [vmem:[#allocation44_spill] sm:$0xff] }
 0x1de   :  { %553 = vmatprep.mubr.f32.mxu1 %v2411_v20  ;;  %v2422_v20 = vld [vmem:[#allocation47_spill] sm:$0xff] }
 0x1e1   :  { %554 = vmatmul.mubr.f32.gmra.mxu1 %v2412_v31  ;;  %v2423_v31 = vld [vmem:[#allocation48_spill] sm:$0xff] }
 0x1e2   :  { %558 = vmatprep.mubr.f32.mxu1 %v2413_v21  ;;  %v2424_v21 = vld [vmem:[#allocation50_spill] sm:$0xff] }
 0x1e5   :  { %559 = vmatmul.mubr.f32.gmra.mxu1 %v2414_v4 }
 0x1e6   :  { %563 = vmatprep.mubr.f32.mxu1 %v2415_v61 }
 0x1e9   :  { %564 = vmatmul.mubr.f32.gmra.mxu1 %v2416_v11 }
 0x1ea   :  { %568 = vmatprep.mubr.f32.mxu1 %v2417_v30 }
 0x1ed   :  { %569 = vmatmul.mubr.f32.gmra.mxu1 %v2418_v8 }
 0x1ee   :  { %573 = vmatprep.mubr.f32.mxu1 %v2419_v5 }
 0x1f1   :  { %574 = vmatmul.mubr.f32.gmra.mxu1 %v2420_v9 }
 0x1f2   :  { %578 = vmatprep.mubr.f32.mxu1 %v2421_v15 }
 0x1f5   :  { %579 = vmatmul.mubr.f32.gmra.mxu1 %v2422_v20  ;;  %v2425_v20 = vld [vmem:[#allocation9_spill] sm:$0xff] }
 0x1f6   :  { %583 = vmatprep.mubr.f32.mxu1 %v2423_v31  ;;  %v337_v31 = vadd.f32 %v1629_v0, %v2425_v20 }
 0x1f9   :  { %584 = vmatmul.mubr.f32.gmra.mxu1 %v2424_v21 }
 0x23d   :  { %v1799_v4 = vpop.f32.mrf.mxu1 }
 0x23f   :  { %v432_v61 = vpop.f32.mrf.mxu1 }
 0x241   :  { %v1801_v11 = vpop.f32.mrf.mxu1 }
 0x243   :  { %v437_v30 = vpop.f32.mrf.mxu1 }
 0x244   :  { %v338_v30 = vadd.f32 %v1633_v26, %v2427_v2  ;;  %v2433_v2 = vld [vmem:[#allocation5_spill] sm:$0xff] }
 0x245   :  { %v1803_v27 = vpop.f32.mrf.mxu1  ;;  %v341_v10 = vadd.f32 %v1645_v62, %v2433_v2 }
 0x247   :  { %v442_v8 = vpop.f32.mrf.mxu1 }
 0x249   :  { %v1805_v5 = vpop.f32.mrf.mxu1 }
 0x24b   :  { %v447_v9 = vpop.f32.mrf.mxu1 }
 0x24d   :  { %v1807_v18 = vpop.f32.mrf.mxu1 }
 0x24f   :  { %v452_v15 = vpop.f32.mrf.mxu1 }
 0x250   :  { %v339_v15 = vadd.f32 %v1637_v19, %v2429_v36  ;;  %v342_v19 = vadd.f32 %v1649_v58, %v2434_v6  ;;  %v979_v58 = vld [vmem:[%s2216_s1 + $0x68] sm:$0xff] }
 0x251   :  { %v1811_v14 = vpop.f32.mrf.mxu1  ;;  %v345_v6 = vadd.f32 %v979_v58, %v1661_v46 }
 0x252   :  { %v1814_v21 = vadd.f32 %v1811_v14, %v337_v31  ;;  %v340_v31 = vadd.f32 %v1641_v3, %v2431_v22 }
 0x253   :  { %v457_v61 = vpop.f32.mrf.mxu1 }
 0x254   :  { %2426 = vst [vmem:[#allocation13_spill] sm:$0xff] %v1814_v21 }
 0x255   :  { %v1818_v7 = vpop.f32.mrf.mxu1 }
 0x256   :  { %v1821_v8 = vadd.f32 %v1818_v7, %v338_v30 }
 0x257   :  { %v462_v9 = vpop.f32.mrf.mxu1 }
 0x258   :  { %2428 = vst [vmem:[#allocation9_spill] sm:$0xff] %v1821_v8 }
 0x259   :  { %v465_v23 = vpop.f32.mrf.mxu1 }
 0x25a   :  { %v1825_v20 = vadd.f32 %v465_v23, %v339_v15 }
 0x25b   :  { %v467_v0 = vpop.f32.mrf.mxu1 }
 0x25c   :  { %2430 = vst [vmem:[#allocation8_spill] sm:$0xff] %v1825_v20  ;;  %v2435_v20 = vld [vmem:[#allocation3_spill] sm:$0xff] }
 0x25d   :  { %v470_v61 = vpop.f32.mrf.mxu1  ;;  %v343_v3 = vadd.f32 %v1653_v54, %v2435_v20  ;;  %v980_v20 = vld [vmem:[%s2216_s1 + $0x70] sm:$0xff] }
 0x25e   :  { %v1829_v21 = vadd.f32 %v470_v61, %v340_v31 }
 0x25f   :  { %v472_v26 = vpop.f32.mrf.mxu1 }
 0x260   :  { %2432 = vst [vmem:[#allocation7_spill] sm:$0xff] %v1829_v21  ;;  %v2437_v21 = vld [vmem:[#allocation2_spill] sm:$0xff] }
 0x261   :  { %v475_v30 = vpop.f32.mrf.mxu1  ;;  %v344_v62 = vadd.f32 %v1657_v50, %v2437_v21  ;;  %v346_v21 = vadd.f32 %v980_v20, %v1665_v42 }
 0x262   :  { %v1833_v8 = vadd.f32 %v475_v30, %v341_v10 }
 0x263   :  { %v477_v9 = vpop.f32.mrf.mxu1 }
 0x265   :  { %v480_v36 = vpop.f32.mrf.mxu1 }
 0x266   :  { %v1837_v15 = vadd.f32 %v480_v36, %v342_v19 }
 0x267   :  { %v482_v0 = vpop.f32.mrf.mxu1 }
 0x269   :  { %v485_v22 = vpop.f32.mrf.mxu1 }
 0x26a   :  { %v1841_v31 = vadd.f32 %v485_v22, %v343_v3 }
 0x26b   :  { %v487_v26 = vpop.f32.mrf.mxu1 }
 0x26c   :  { %2436 = vst [vmem:[#allocation6_spill] sm:$0xff] %v1841_v31 }
 0x26d   :  { %v490_v10 = vpop.f32.mrf.mxu1 }
 0x26e   :  { %v1845_v2 = vadd.f32 %v490_v10, %v344_v62  ;;  %v981_v62 = vld [vmem:[%s2216_s1 + $0x78] sm:$0xff] }
 0x26f   :  { %v492_v9 = vpop.f32.mrf.mxu1  ;;  %v347_v46 = vadd.f32 %v981_v62, %v1669_v38 }
 0x270   :  { %2438 = vst [vmem:[#allocation5_spill] sm:$0xff] %v1845_v2 }
 0x271   :  { %v495_v19 = vpop.f32.mrf.mxu1 }
 0x272   :  { %v1851_v0 = vadd.f32 %v495_v19, %v345_v6 }
 0x273   :  { %v497_v54 = vpop.f32.mrf.mxu1 }
 0x274   :  { %2439 = vst [vmem:[#allocation4_spill] sm:$0xff] %v1851_v0  ;;  %v2444_v0 = vld [vmem:[#allocation10_spill] sm:$0xff] }
 0x275   :  { %v500_v50 = vpop.f32.mrf.mxu1 }
 0x276   :  { %v1857_v3 = vadd.f32 %v500_v50, %v346_v21 }
 0x277   :  { %v502_v26 = vpop.f32.mrf.mxu1 }
 0x278   :  { %2440 = vst [vmem:[#allocation3_spill] sm:$0xff] %v1857_v3 }
 0x279   :  { %v505_v9 = vpop.f32.mrf.mxu1 }
 0x27a   :  { %v1863_v58 = vadd.f32 %v505_v9, %v347_v46  ;;  %622 = vmatpush1.msra.mxu0 %v505_v9 }
 0x27b   :  { %v507_v6 = vpop.f32.mrf.mxu1  ;;  %623 = vmatprep.subr.mxu0 %v2386_v37 }
 0x27c   :  { %2441 = vst [vmem:[#allocation2_spill] sm:$0xff] %v1863_v58  ;;  %624 = vmatpush1.msra.mxu0 %v500_v50 }
 0x27d   :  { %v1866_v54 = vpop.f32.mrf.mxu1  ;;  %625 = vmatprep.subr.mxu0 %v2386_v37 }
 0x27e   :  { %626 = vmatpush1.msra.mxu0 %v495_v19 }
 0x27f   :  { %v512_v42 = vpop.f32.mrf.mxu1  ;;  %627 = vmatprep.subr.mxu0 %v2386_v37 }
 0x280   :  { %628 = vmatpush1.msra.mxu0 %v490_v10  ;;  %v2442_v42 = vld [vmem:[#allocation12_spill] sm:$0xff] }
 0x281   :  { %v1870_v20 = vpop.f32.mrf.mxu1  ;;  %629 = vmatprep.subr.mxu0 %v2386_v37 }
 0x282   :  { %630 = vmatpush1.msra.mxu0 %v485_v22 }
 0x283   :  { %v517_v38 = vpop.f32.mrf.mxu1  ;;  %631 = vmatprep.subr.mxu0 %v2386_v37 }
 0x284   :  { %632 = vmatpush1.msra.mxu0 %v480_v36  ;;  %v358_v38 = vadd.f32 %v1651_v57, %v2442_v42  ;;  %v982_v57 = vld [vmem:[%s2216_s1 + $0xe8] sm:$0xff] }
 0x285   :  { %v1874_v21 = vpop.f32.mrf.mxu1  ;;  %633 = vmatprep.subr.mxu0 %v2386_v37  ;;  %v361_v42 = vadd.f32 %v982_v57, %v1663_v45 }
 0x286   :  { %634 = vmatpush1.msra.mxu0 %v475_v30 }
 0x287   :  { %v522_v50 = vpop.f32.mrf.mxu1  ;;  %635 = vmatprep.subr.mxu0 %v2386_v37 }
 0x288   :  { %636 = vmatpush1.msra.mxu0 %v470_v61 }
 0x289   :  { %v1878_v19 = vpop.f32.mrf.mxu1  ;;  %637 = vmatprep.subr.mxu0 %v2386_v37 }
 0x28a   :  { %638 = vmatpush1.msra.mxu0 %v465_v23 }
 0x28b   :  { %v527_v10 = vpop.f32.mrf.mxu1  ;;  %639 = vmatprep.subr.mxu0 %v2386_v37 }
 0x28c   :  { %640 = vmatpush1.msra.mxu0 %v1818_v7 }
 0x28d   :  { %v1883_v36 = vpop.f32.mrf.mxu1  ;;  %641 = vmatprep.subr.mxu0 %v2386_v37 }
 0x28e   :  { %642 = vmatpush1.msra.mxu0 %v1811_v14 }
 0x28f   :  { %v532_v30 = vpop.f32.mrf.mxu1  ;;  %643 = vmatprep.subr.mxu0 %v2386_v37 }
 0x290   :  { %644 = vmatpush1.msra.mxu0 %v1807_v18 }
 0x291   :  { %v1889_v61 = vpop.f32.mrf.mxu1  ;;  %645 = vmatprep.subr.mxu0 %v2386_v37 }
 0x292   :  { %646 = vmatpush1.msra.mxu0 %v1805_v5 }
 0x293   :  { %v537_v23 = vpop.f32.mrf.mxu1  ;;  %647 = vmatprep.subr.mxu0 %v2386_v37 }
 0x294   :  { %648 = vmatpush1.msra.mxu0 %v1803_v27  ;;  %v2443_v23 = vld [vmem:[#allocation11_spill] sm:$0xff] }
 0x295   :  { %v1895_v7 = vpop.f32.mrf.mxu1  ;;  %649 = vmatprep.subr.mxu0 %v2386_v37 }
 0x296   :  { %650 = vmatpush1.msra.mxu0 %v1801_v11 }
 0x297   :  { %v542_v14 = vpop.f32.mrf.mxu1  ;;  %651 = vmatprep.subr.mxu0 %v2386_v37 }
 0x298   :  { %652 = vmatpush1.msra.mxu0 %v1799_v4  ;;  %v359_v14 = vadd.f32 %v1655_v53, %v2443_v23  ;;  %v983_v23 = vld [vmem:[%s2216_s1 + $0xf0] sm:$0xff] }
 0x299   :  { %v1901_v22 = vpop.f32.mrf.mxu1  ;;  %653 = vmatprep.subr.mxu0 %v2386_v37 }
 0x29b   :  { %v547_v26 = vpop.f32.mrf.mxu1 }
 0x29d   :  { %v1904_v62 = vpop.f32.mrf.mxu1 }
 0x29f   :  { %v552_v46 = vpop.f32.mrf.mxu1 }
 0x2a0   :  { %v360_v46 = vadd.f32 %v1659_v49, %v2444_v0  ;;  %v362_v49 = vadd.f32 %v983_v23, %v1667_v41  ;;  %v2470_v41 = vld [vmem:[#allocation33_spill] sm:$0xff]  ;;  %v2477_v23 = vld [vmem:[#allocation43_spill] sm:$0xff] }
 0x2a1   :  { %v1906_v9 = vpop.f32.mrf.mxu1 }
 0x2a3   :  { %v557_v6 = vpop.f32.mrf.mxu1 }
 0x2a5   :  { %v560_v50 = vpop.f32.mrf.mxu1 }
 0x2a6   :  { %v1910_v10 = vadd.f32 %v560_v50, %v358_v38 }
 0x2a7   :  { %v562_v30 = vpop.f32.mrf.mxu1 }
 0x2a9   :  { %v565_v58 = vpop.f32.mrf.mxu1 }
 0x2aa   :  { %v1914_v3 = vadd.f32 %v565_v58, %v359_v14 }
 0x2ab   :  { %v567_v26 = vpop.f32.mrf.mxu1 }
 0x2ad   :  { %v570_v2 = vpop.f32.mrf.mxu1 }
 0x2ae   :  { %v1918_v31 = vadd.f32 %v570_v2, %v360_v46  ;;  %v984_v46 = vld [vmem:[%s2216_s1 + $0xf8] sm:$0xff] }
 0x2af   :  { %v572_v6 = vpop.f32.mrf.mxu1  ;;  %v363_v45 = vadd.f32 %v984_v46, %v1673_v33  ;;  %v2469_v33 = vld [vmem:[#allocation32_spill] sm:$0xff]  ;;  %v2481_v46 = vld [vmem:[#allocation50_spill] sm:$0xff] }
 0x2b1   :  { %v575_v38 = vpop.f32.mrf.mxu1 }
 0x2b2   :  { %v1924_v30 = vadd.f32 %v575_v38, %v361_v42 }
 0x2b3   :  { %v577_v53 = vpop.f32.mrf.mxu1 }
 0x2b4   :  { %v2476_v53 = vld [vmem:[#allocation40_spill] sm:$0xff] }
 0x2b5   :  { %v580_v0 = vpop.f32.mrf.mxu1 }
 0x2b6   :  { %v1930_v14 = vadd.f32 %v580_v0, %v362_v49  ;;  %v2478_v49 = vld [vmem:[#allocation44_spill] sm:$0xff] }
 0x2b7   :  { %v582_v26 = vpop.f32.mrf.mxu1 }
 0x2b8   :  { %v2480_v26 = vld [vmem:[#allocation48_spill] sm:$0xff] }
 0x2b9   :  { %v585_v6 = vpop.f32.mrf.mxu1 }
 0x2ba   :  { %v1936_v57 = vadd.f32 %v585_v6, %v363_v45  ;;  %654 = vmatpush2.msra.mxu0 %v585_v6  ;;  %v986_v45 = vld [vmem:[%s2216_s1] sm:$0xff]  ;;  %v2482_v6 = vld [vmem:[#allocation51_spill] sm:$0xff] }
 0x2bb   :  { %v587_v42 = vpop.f32.mrf.mxu1  ;;  %655 = vmatprep.subr.mxu0 %v2386_v37 }
 0x2bc   :  { %656 = vmatpush2.msra.mxu0 %v580_v0  ;;  %v2479_v0 = vld [vmem:[#allocation47_spill] sm:$0xff]  ;;  %v332_v42 = vadd.f32 %v986_v45, %v2482_v6 }
 0x2bd   :  { %657 = vmatprep.subr.mxu0 %v2386_v37 }
 0x2be   :  { %658 = vmatpush2.msra.mxu0 %v575_v38  ;;  %v2475_v38 = vld [vmem:[#allocation39_spill] sm:$0xff] }
 0x2bf   :  { %659 = vmatprep.subr.mxu0 %v2386_v37 }
 0x2c0   :  { %660 = vmatpush2.msra.mxu0 %v570_v2  ;;  %v2472_v2 = vld [vmem:[#allocation35_spill] sm:$0xff] }
 0x2c1   :  { %661 = vmatprep.subr.mxu0 %v2386_v37 }
 0x2c2   :  { %662 = vmatpush2.msra.mxu0 %v565_v58  ;;  %v2473_v58 = vld [vmem:[#allocation36_spill] sm:$0xff] }
 0x2c3   :  { %663 = vmatprep.subr.mxu0 %v2386_v37 }
 0x2c4   :  { %664 = vmatpush2.msra.mxu0 %v560_v50  ;;  %v2474_v50 = vld [vmem:[#allocation37_spill] sm:$0xff] }
 0x2c5   :  { %665 = vmatprep.subr.mxu0 %v2386_v37 }
 0x2c6   :  { %666 = vmatpush2.msra.mxu0 %v1906_v9 }
 0x2c7   :  { %667 = vmatprep.subr.mxu0 %v2386_v37 }
 0x2c8   :  { %668 = vmatpush2.msra.mxu0 %v1904_v62 }
 0x2c9   :  { %669 = vmatprep.subr.mxu0 %v2386_v37 }
 0x2ca   :  { %670 = vmatpush2.msra.mxu0 %v1901_v22 }
 0x2cb   :  { %671 = vmatprep.subr.mxu0 %v2386_v37 }
 0x2cc   :  { %672 = vmatpush2.msra.mxu0 %v1895_v7 }
 0x2cd   :  { %673 = vmatprep.subr.mxu0 %v2386_v37 }
 0x2ce   :  { %674 = vmatpush2.msra.mxu0 %v1889_v61 }
 0x2cf   :  { %675 = vmatprep.subr.mxu0 %v2386_v37 }
 0x2d0   :  { %676 = vmatpush2.msra.mxu0 %v1883_v36 }
 0x2d1   :  { %677 = vmatprep.subr.mxu0 %v2386_v37 }
 0x2d2   :  { %678 = vmatpush2.msra.mxu0 %v1878_v19 }
 0x2d3   :  { %679 = vmatprep.subr.mxu0 %v2386_v37 }
 0x2d4   :  { %680 = vmatpush2.msra.mxu0 %v1874_v21 }
 0x2d5   :  { %681 = vmatprep.subr.mxu0 %v2386_v37 }
 0x2d6   :  { %682 = vmatpush2.msra.mxu0 %v1870_v20 }
 0x2d7   :  { %683 = vmatprep.subr.mxu0 %v2386_v37  ;;  %v2471_v37 = vld [vmem:[#allocation34_spill] sm:$0xff] }
 0x2d8   :  { %684 = vmatpush2.msra.mxu0 %v1866_v54 }
 0x2d9   :  { %686 = vmatmul.mubr.f32.vlgmr.msra.gmra.mxu0 %v1227_v34  ;;  %v2445_v34 = vld [vmem:[#allocation38_spill] sm:$0xff] }
 0x2da   :  { %690 = vmatprep.mubr.f32.mxu0 %v1234_v35  ;;  %v2446_v35 = vld [vmem:[#allocation41_spill] sm:$0xff] }
 0x2dd   :  { %691 = vmatmul.mubr.f32.gmra.mxu0 %v1257_v39  ;;  %v2447_v39 = vld [vmem:[#allocation42_spill] sm:$0xff] }
 0x2de   :  { %695 = vmatprep.mubr.f32.mxu0 %v1263_v40  ;;  %v2448_v40 = vld [vmem:[#allocation45_spill] sm:$0xff] }
 0x2e1   :  { %696 = vmatmul.mubr.f32.gmra.mxu0 %v1284_v43  ;;  %v2449_v43 = vld [vmem:[#allocation46_spill] sm:$0xff] }
 0x2e2   :  { %700 = vmatprep.mubr.f32.mxu0 %v1289_v44  ;;  %v2450_v44 = vld [vmem:[#allocation49_spill] sm:$0xff] }
 0x2e5   :  { %701 = vmatmul.mubr.f32.gmra.mxu0 %v1308_v47  ;;  %v985_v47 = vld [vmem:[%s2217_s0 + $0x108] sm:$0xff] }
 0x2e6   :  { %705 = vmatprep.mubr.f32.mxu0 %v1313_v48  ;;  %v2451_v48 = vld [vmem:[#allocation14_spill] sm:$0xff] }
 0x2e9   :  { %706 = vmatmul.mubr.f32.gmra.mxu0 %v1332_v51  ;;  %v2452_v51 = vld [vmem:[#allocation15_spill] sm:$0xff] }
 0x2ea   :  { %710 = vmatprep.mubr.f32.mxu0 %v1337_v52  ;;  %v2453_v52 = vld [vmem:[#allocation16_spill] sm:$0xff] }
 0x2ed   :  { %711 = vmatmul.mubr.f32.gmra.mxu0 %v1356_v55  ;;  %v2454_v55 = vld [vmem:[#allocation17_spill] sm:$0xff] }
 0x2ee   :  { %715 = vmatprep.mubr.f32.mxu0 %v1361_v56  ;;  %v2455_v56 = vld [vmem:[#allocation18_spill] sm:$0xff] }
 0x2f1   :  { %716 = vmatmul.mubr.f32.gmra.mxu0 %v1380_v59  ;;  %v2456_v59 = vld [vmem:[#allocation19_spill] sm:$0xff] }
 0x2f2   :  { %720 = vmatprep.mubr.f32.mxu0 %v1385_v60  ;;  %v2457_v60 = vld [vmem:[#allocation20_spill] sm:$0xff] }
 0x2f5   :  { %721 = vmatmul.mubr.f32.gmra.mxu0 %v1404_v63  ;;  %v2458_v63 = vld [vmem:[#allocation21_spill] sm:$0xff] }
 0x2f6   :  { %725 = vmatprep.mubr.f32.mxu0 %v1409_v1  ;;  %v2459_v1 = vld [vmem:[#allocation22_spill] sm:$0xff] }
 0x2f9   :  { %726 = vmatmul.mubr.f32.gmra.mxu0 %v1428_v12  ;;  %v2460_v12 = vld [vmem:[#allocation23_spill] sm:$0xff] }
 0x2fa   :  { %730 = vmatprep.mubr.f32.mxu0 %v1433_v13  ;;  %v2461_v13 = vld [vmem:[#allocation24_spill] sm:$0xff] }
 0x2fd   :  { %731 = vmatmul.mubr.f32.gmra.mxu0 %v1452_v16  ;;  %v2462_v16 = vld [vmem:[#allocation25_spill] sm:$0xff] }
 0x2fe   :  { %735 = vmatprep.mubr.f32.mxu0 %v1457_v17  ;;  %v2463_v17 = vld [vmem:[#allocation26_spill] sm:$0xff] }
 0x301   :  { %736 = vmatmul.mubr.f32.gmra.mxu0 %v1476_v24  ;;  %v2464_v24 = vld [vmem:[#allocation27_spill] sm:$0xff] }
 0x302   :  { %740 = vmatprep.mubr.f32.mxu0 %v1481_v25  ;;  %v2465_v25 = vld [vmem:[#allocation28_spill] sm:$0xff] }
 0x305   :  { %741 = vmatmul.mubr.f32.gmra.mxu0 %v1500_v28  ;;  %v2466_v28 = vld [vmem:[#allocation29_spill] sm:$0xff] }
 0x306   :  { %745 = vmatprep.mubr.f32.mxu0 %v1505_v29  ;;  %v2467_v29 = vld [vmem:[#allocation30_spill] sm:$0xff] }
 0x309   :  { %746 = vmatmul.mubr.f32.gmra.mxu0 %v1524_v32  ;;  %v2468_v32 = vld [vmem:[#allocation31_spill] sm:$0xff] }
 0x30a   :  { %750 = vmatprep.mubr.f32.mxu0 %v2445_v34  ;;  %v589_v34 = vadd.f32 %v1799_v4, %v332_v42  ;;  %v988_v4 = vld [vmem:[%s2216_s1 + $0x10] sm:$0xff]  ;;  %v2490_v42 = vld [vmem:[#allocation7_spill] sm:$0xff] }
 0x30d   :  { %751 = vmatmul.mubr.f32.gmra.mxu0 %v2446_v35 }
 0x30e   :  { %755 = vmatprep.mubr.f32.mxu0 %v2447_v39  ;;  %v987_v39 = vld [vmem:[%s2216_s1 + $0x8] sm:$0xff] }
 0x311   :  { %756 = vmatmul.mubr.f32.gmra.mxu0 %v2448_v40  ;;  %v2483_v40 = vld [vmem:[#allocation53_spill] sm:$0xff] }
 0x312   :  { %760 = vmatprep.mubr.f32.mxu0 %v2449_v43  ;;  %v333_v43 = vadd.f32 %v987_v39, %v2483_v40 }
 0x315   :  { %761 = vmatmul.mubr.f32.gmra.mxu0 %v2450_v44 }
 0x316   :  { %765 = vmatprep.mubr.f32.mxu0 %v985_v47 }
 0x319   :  { %766 = vmatmul.mubr.f32.gmra.mxu0 %v2451_v48  ;;  %v590_v48 = vadd.f32 %v1801_v11, %v333_v43 }
 0x31a   :  { %770 = vmatprep.mubr.f32.mxu0 %v2452_v51 }
 0x31d   :  { %771 = vmatmul.mubr.f32.gmra.mxu0 %v2453_v52  ;;  %v2484_v52 = vld [vmem:[#allocation55_spill] sm:$0xff] }
 0x31e   :  { %775 = vmatprep.mubr.f32.mxu0 %v2454_v55  ;;  %v334_v55 = vadd.f32 %v988_v4, %v2484_v52  ;;  %v2491_v4 = vld [vmem:[#allocation6_spill] sm:$0xff] }
 0x321   :  { %776 = vmatmul.mubr.f32.gmra.mxu0 %v2455_v56 }
 0x322   :  { %780 = vmatprep.mubr.f32.mxu0 %v2456_v59 }
 0x325   :  { %781 = vmatmul.mubr.f32.gmra.mxu0 %v2457_v60  ;;  %v591_v60 = vadd.f32 %v1803_v27, %v334_v55 }
 0x326   :  { %785 = vmatprep.mubr.f32.mxu0 %v2458_v63  ;;  %v989_v63 = vld [vmem:[%s2216_s1 + $0x18] sm:$0xff] }
 0x329   :  { %786 = vmatmul.mubr.f32.gmra.mxu0 %v2459_v1  ;;  %v2485_v1 = vld [vmem:[#allocation57_spill] sm:$0xff] }
 0x32a   :  { %790 = vmatprep.mubr.f32.mxu0 %v2460_v12  ;;  %v335_v12 = vadd.f32 %v989_v63, %v2485_v1 }
 0x32d   :  { %791 = vmatmul.mubr.f32.gmra.mxu0 %v2461_v13 }
 0x32e   :  { %795 = vmatprep.mubr.f32.mxu0 %v2462_v16 }
 0x331   :  { %796 = vmatmul.mubr.f32.gmra.mxu0 %v2463_v17  ;;  %v592_v17 = vadd.f32 %v1805_v5, %v335_v12 }
 0x332   :  { %800 = vmatprep.mubr.f32.mxu0 %v2464_v24  ;;  %v990_v24 = vld [vmem:[%s2216_s1 + $0x20] sm:$0xff] }
 0x335   :  { %801 = vmatmul.mubr.f32.gmra.mxu0 %v2465_v25  ;;  %v2486_v25 = vld [vmem:[#allocation59_spill] sm:$0xff] }
 0x336   :  { %805 = vmatprep.mubr.f32.mxu0 %v2466_v28  ;;  %v336_v28 = vadd.f32 %v990_v24, %v2486_v25  ;;  %v991_v24 = vld [vmem:[%s2216_s1 + $0x80] sm:$0xff]  ;;  %v2495_v25 = vld [vmem:[#allocation52_spill] sm:$0xff] }
 0x339   :  { %806 = vmatmul.mubr.f32.gmra.mxu0 %v2467_v29 }
 0x33a   :  { %810 = vmatprep.mubr.f32.mxu0 %v2468_v32 }
 0x33d   :  { %811 = vmatmul.mubr.f32.gmra.mxu0 %v2469_v33  ;;  %v593_v33 = vadd.f32 %v1807_v18, %v336_v28  ;;  %v348_v28 = vadd.f32 %v991_v24, %v2495_v25 }
 0x33e   :  { %815 = vmatprep.mubr.f32.mxu0 %v2470_v41 }
 0x341   :  { %816 = vmatmul.mubr.f32.gmra.mxu0 %v2471_v37 }
 0x342   :  { %820 = vmatprep.mubr.f32.mxu0 %v2472_v2 }
 0x345   :  { %821 = vmatmul.mubr.f32.gmra.mxu0 %v2473_v58  ;;  %v2487_v58 = vld [vmem:[#allocation13_spill] sm:$0xff] }
 0x346   :  { %825 = vmatprep.mubr.f32.mxu0 %v2474_v50 }
 0x349   :  { %826 = vmatmul.mubr.f32.gmra.mxu0 %v2475_v38 }
 0x34a   :  { %830 = vmatprep.mubr.f32.mxu0 %v2476_v53  ;;  %v2488_v53 = vld [vmem:[#allocation9_spill] sm:$0xff] }
 0x34d   :  { %831 = vmatmul.mubr.f32.gmra.mxu0 %v2477_v23 }
 0x34e   :  { %835 = vmatprep.mubr.f32.mxu0 %v2478_v49 }
 0x351   :  { %836 = vmatmul.mubr.f32.gmra.mxu0 %v2479_v0 }
 0x352   :  { %840 = vmatprep.mubr.f32.mxu0 %v2480_v26  ;;  %v2489_v26 = vld [vmem:[#allocation8_spill] sm:$0xff] }
 0x355   :  { %841 = vmatmul.mubr.f32.gmra.mxu0 %v2481_v46 }
 0x399   :  { %v687_v35 = vpop.f32.mrf.mxu0 }
 0x39a   :  { %v846_v44 = vadd.f32 %v687_v35, %v589_v34 }
 0x39b   :  { %v689_v47 = vpop.f32.mrf.mxu0 }
 0x39c   :  { %878 = vst [vmem:[%s2218_s2] sm:$0xff] %v846_v44 }
 0x39d   :  { %v692_v51 = vpop.f32.mrf.mxu0 }
 0x39e   :  { %v847_v56 = vadd.f32 %v692_v51, %v590_v48 }
 0x39f   :  { %v694_v59 = vpop.f32.mrf.mxu0 }
 0x3a0   :  { %879 = vst [vmem:[%s2218_s2 + $0x8] sm:$0xff] %v847_v56  ;;  %v2492_v56 = vld [vmem:[#allocation5_spill] sm:$0xff] }
 0x3a1   :  { %v697_v11 = vpop.f32.mrf.mxu0 }
 0x3a2   :  { %v848_v13 = vadd.f32 %v697_v11, %v591_v60  ;;  %v2493_v11 = vld [vmem:[#allocation4_spill] sm:$0xff] }
 0x3a3   :  { %v699_v16 = vpop.f32.mrf.mxu0 }
 0x3a4   :  { %880 = vst [vmem:[%s2218_s2 + $0x10] sm:$0xff] %v848_v13  ;;  %v2494_v13 = vld [vmem:[#allocation3_spill] sm:$0xff] }
 0x3a5   :  { %v702_v27 = vpop.f32.mrf.mxu0 }
 0x3a6   :  { %v849_v29 = vadd.f32 %v702_v27, %v592_v17 }
 0x3a7   :  { %v704_v32 = vpop.f32.mrf.mxu0 }
 0x3a8   :  { %881 = vst [vmem:[%s2218_s2 + $0x18] sm:$0xff] %v849_v29  ;;  %v2496_v29 = vld [vmem:[#allocation2_spill] sm:$0xff] }
 0x3a9   :  { %v707_v5 = vpop.f32.mrf.mxu0 }
 0x3aa   :  { %v850_v41 = vadd.f32 %v707_v5, %v593_v33  ;;  %v605_v5 = vadd.f32 %v1866_v54, %v348_v28  ;;  %v999_v28 = vld [vmem:[%s2216_s1 + $0xc0] sm:$0xff] }
 0x3ab   :  { %v709_v37 = vpop.f32.mrf.mxu0 }
 0x3ac   :  { %882 = vst [vmem:[%s2218_s2 + $0x20] sm:$0xff] %v850_v41  ;;  %v992_v37 = vld [vmem:[%s2216_s1 + $0x88] sm:$0xff] }
 0x3ad   :  { %v712_v2 = vpop.f32.mrf.mxu0 }
 0x3ae   :  { %v851_v50 = vadd.f32 %v712_v2, %v2487_v58  ;;  %v2497_v2 = vld [vmem:[#allocation54_spill] sm:$0xff] }
 0x3af   :  { %v714_v38 = vpop.f32.mrf.mxu0  ;;  %v349_v58 = vadd.f32 %v992_v37, %v2497_v2  ;;  %v1000_v37 = vld [vmem:[%s2216_s1 + $0xc8] sm:$0xff]  ;;  %v2505_v2 = vld [vmem:[#allocation65_spill] sm:$0xff] }
 0x3b0   :  { %883 = vst [vmem:[%s2218_s2 + $0x28] sm:$0xff] %v851_v50 }
 0x3b1   :  { %v717_v18 = vpop.f32.mrf.mxu0 }
 0x3b2   :  { %v852_v23 = vadd.f32 %v717_v18, %v2488_v53  ;;  %v606_v18 = vadd.f32 %v1870_v20, %v349_v58  ;;  %v993_v53 = vld [vmem:[%s2216_s1 + $0x90] sm:$0xff]  ;;  %v357_v58 = vadd.f32 %v1000_v37, %v2505_v2 }
 0x3b3   :  { %v719_v49 = vpop.f32.mrf.mxu0 }
 0x3b4   :  { %884 = vst [vmem:[%s2218_s2 + $0x30] sm:$0xff] %v852_v23  ;;  %v2498_v23 = vld [vmem:[#allocation56_spill] sm:$0xff] }
 0x3b5   :  { %v722_v0 = vpop.f32.mrf.mxu0  ;;  %v350_v49 = vadd.f32 %v993_v53, %v2498_v23 }
 0x3b6   :  { %v853_v46 = vadd.f32 %v722_v0, %v2489_v26 }
 0x3b7   :  { %v724_v45 = vpop.f32.mrf.mxu0 }
 0x3b8   :  { %885 = vst [vmem:[%s2218_s2 + $0x38] sm:$0xff] %v853_v46  ;;  %v607_v46 = vadd.f32 %v1874_v21, %v350_v49  ;;  %v994_v45 = vld [vmem:[%s2216_s1 + $0x98] sm:$0xff] }
 0x3b9   :  { %v727_v6 = vpop.f32.mrf.mxu0 }
 0x3ba   :  { %v854_v34 = vadd.f32 %v727_v6, %v2490_v42  ;;  %v2499_v6 = vld [vmem:[#allocation58_spill] sm:$0xff] }
 0x3bb   :  { %v729_v35 = vpop.f32.mrf.mxu0  ;;  %v351_v42 = vadd.f32 %v994_v45, %v2499_v6 }
 0x3bc   :  { %886 = vst [vmem:[%s2218_s2 + $0x40] sm:$0xff] %v854_v34 }
 0x3bd   :  { %v732_v39 = vpop.f32.mrf.mxu0 }
 0x3be   :  { %v855_v40 = vadd.f32 %v732_v39, %v1833_v8  ;;  %v608_v39 = vadd.f32 %v1878_v19, %v351_v42 }
 0x3bf   :  { %v734_v43 = vpop.f32.mrf.mxu0 }
 0x3c0   :  { %887 = vst [vmem:[%s2218_s2 + $0x48] sm:$0xff] %v855_v40  ;;  %v995_v40 = vld [vmem:[%s2216_s1 + $0xa0] sm:$0xff]  ;;  %v2500_v43 = vld [vmem:[#allocation60_spill] sm:$0xff] }
 0x3c1   :  { %v737_v44 = vpop.f32.mrf.mxu0 }
 0x3c2   :  { %v856_v47 = vadd.f32 %v737_v44, %v1837_v15  ;;  %v352_v44 = vadd.f32 %v995_v40, %v2500_v43 }
 0x3c3   :  { %v739_v48 = vpop.f32.mrf.mxu0 }
 0x3c4   :  { %888 = vst [vmem:[%s2218_s2 + $0x50] sm:$0xff] %v856_v47 }
 0x3c5   :  { %v742_v51 = vpop.f32.mrf.mxu0 }
 0x3c6   :  { %v857_v52 = vadd.f32 %v742_v51, %v2491_v4  ;;  %v609_v51 = vadd.f32 %v1883_v36, %v352_v44  ;;  %v996_v4 = vld [vmem:[%s2216_s1 + $0xa8] sm:$0xff] }
 0x3c7   :  { %v744_v55 = vpop.f32.mrf.mxu0 }
 0x3c8   :  { %889 = vst [vmem:[%s2218_s2 + $0x58] sm:$0xff] %v857_v52  ;;  %v2501_v52 = vld [vmem:[#allocation61_spill] sm:$0xff] }
 0x3c9   :  { %v747_v8 = vpop.f32.mrf.mxu0  ;;  %v353_v55 = vadd.f32 %v996_v4, %v2501_v52 }
 0x3ca   :  { %v858_v59 = vadd.f32 %v747_v8, %v2492_v56 }
 0x3cb   :  { %v749_v60 = vpop.f32.mrf.mxu0 }
 0x3cc   :  { %890 = vst [vmem:[%s2218_s2 + $0x60] sm:$0xff] %v858_v59  ;;  %v610_v59 = vadd.f32 %v1889_v61, %v353_v55  ;;  %v997_v60 = vld [vmem:[%s2216_s1 + $0xb0] sm:$0xff] }
 0x3cd   :  { %v752_v15 = vpop.f32.mrf.mxu0 }
 0x3ce   :  { %v859_v63 = vadd.f32 %v752_v15, %v2493_v11  ;;  %v2502_v15 = vld [vmem:[#allocation62_spill] sm:$0xff] }
 0x3cf   :  { %v754_v1 = vpop.f32.mrf.mxu0  ;;  %v354_v11 = vadd.f32 %v997_v60, %v2502_v15 }
 0x3d0   :  { %891 = vst [vmem:[%s2218_s2 + $0x68] sm:$0xff] %v859_v63 }
 0x3d1   :  { %v757_v12 = vpop.f32.mrf.mxu0 }
 0x3d2   :  { %v860_v16 = vadd.f32 %v757_v12, %v2494_v13  ;;  %v611_v12 = vadd.f32 %v1895_v7, %v354_v11  ;;  %v998_v13 = vld [vmem:[%s2216_s1 + $0xb8] sm:$0xff] }
 0x3d3   :  { %v759_v17 = vpop.f32.mrf.mxu0 }
 0x3d4   :  { %892 = vst [vmem:[%s2218_s2 + $0x70] sm:$0xff] %v860_v16  ;;  %v2503_v16 = vld [vmem:[#allocation63_spill] sm:$0xff] }
 0x3d5   :  { %v762_v27 = vpop.f32.mrf.mxu0  ;;  %v355_v17 = vadd.f32 %v998_v13, %v2503_v16 }
 0x3d6   :  { %v861_v32 = vadd.f32 %v762_v27, %v2496_v29  ;;  %v2504_v29 = vld [vmem:[#allocation64_spill] sm:$0xff] }
 0x3d7   :  { %v764_v33 = vpop.f32.mrf.mxu0  ;;  %v612_v25 = vadd.f32 %v1901_v22, %v355_v17 }
 0x3d8   :  { %893 = vst [vmem:[%s2218_s2 + $0x78] sm:$0xff] %v861_v32  ;;  %v356_v32 = vadd.f32 %v999_v28, %v2504_v29 }
 0x3d9   :  { %v767_v41 = vpop.f32.mrf.mxu0 }
 0x3da   :  { %v862_v50 = vadd.f32 %v767_v41, %v605_v5  ;;  %v613_v41 = vadd.f32 %v1904_v62, %v356_v32 }
 0x3db   :  { %v769_v38 = vpop.f32.mrf.mxu0 }
 0x3dc   :  { %894 = vst [vmem:[%s2218_s2 + $0x80] sm:$0xff] %v862_v50 }
 0x3dd   :  { %v772_v54 = vpop.f32.mrf.mxu0 }
 0x3de   :  { %v863_v0 = vadd.f32 %v772_v54, %v606_v18  ;;  %v614_v18 = vadd.f32 %v1906_v9, %v357_v58 }
 0x3df   :  { %v774_v26 = vpop.f32.mrf.mxu0 }
 0x3e0   :  { %895 = vst [vmem:[%s2218_s2 + $0x88] sm:$0xff] %v863_v0 }
 0x3e1   :  { %v777_v20 = vpop.f32.mrf.mxu0 }
 0x3e2   :  { %v864_v34 = vadd.f32 %v777_v20, %v607_v46 }
 0x3e3   :  { %v779_v35 = vpop.f32.mrf.mxu0 }
 0x3e4   :  { %896 = vst [vmem:[%s2218_s2 + $0x90] sm:$0xff] %v864_v34 }
 0x3e5   :  { %v782_v21 = vpop.f32.mrf.mxu0 }
 0x3e6   :  { %v865_v47 = vadd.f32 %v782_v21, %v608_v39 }
 0x3e7   :  { %v784_v48 = vpop.f32.mrf.mxu0 }
 0x3e8   :  { %897 = vst [vmem:[%s2218_s2 + $0x98] sm:$0xff] %v865_v47 }
 0x3e9   :  { %v787_v19 = vpop.f32.mrf.mxu0 }
 0x3ea   :  { %v866_v8 = vadd.f32 %v787_v19, %v609_v51 }
 0x3eb   :  { %v789_v56 = vpop.f32.mrf.mxu0 }
 0x3ec   :  { %898 = vst [vmem:[%s2218_s2 + $0xa0] sm:$0xff] %v866_v8 }
 0x3ed   :  { %v792_v36 = vpop.f32.mrf.mxu0 }
 0x3ee   :  { %v867_v63 = vadd.f32 %v792_v36, %v610_v59 }
 0x3ef   :  { %v794_v1 = vpop.f32.mrf.mxu0 }
 0x3f0   :  { %899 = vst [vmem:[%s2218_s2 + $0xa8] sm:$0xff] %v867_v63 }
 0x3f1   :  { %v797_v61 = vpop.f32.mrf.mxu0 }
 0x3f2   :  { %v868_v27 = vadd.f32 %v797_v61, %v611_v12 }
 0x3f3   :  { %v799_v24 = vpop.f32.mrf.mxu0 }
 0x3f4   :  { %900 = vst [vmem:[%s2218_s2 + $0xb0] sm:$0xff] %v868_v27 }
 0x3f5   :  { %v802_v7 = vpop.f32.mrf.mxu0 }
 0x3f6   :  { %v869_v33 = vadd.f32 %v802_v7, %v612_v25 }
 0x3f7   :  { %v804_v5 = vpop.f32.mrf.mxu0 }
 0x3f8   :  { %901 = vst [vmem:[%s2218_s2 + $0xb8] sm:$0xff] %v869_v33 }
 0x3f9   :  { %v807_v22 = vpop.f32.mrf.mxu0 }
 0x3fa   :  { %v870_v50 = vadd.f32 %v807_v22, %v613_v41 }
 0x3fb   :  { %v809_v38 = vpop.f32.mrf.mxu0 }
 0x3fc   :  { %902 = vst [vmem:[%s2218_s2 + $0xc0] sm:$0xff] %v870_v50 }
 0x3fd   :  { %v812_v62 = vpop.f32.mrf.mxu0 }
 0x3fe   :  { %v871_v54 = vadd.f32 %v812_v62, %v614_v18 }
 0x3ff   :  { %v814_v53 = vpop.f32.mrf.mxu0 }
 0x400   :  { %903 = vst [vmem:[%s2218_s2 + $0xc8] sm:$0xff] %v871_v54 }
 0x401   :  { %v817_v23 = vpop.f32.mrf.mxu0 }
 0x402   :  { %v872_v49 = vadd.f32 %v817_v23, %v1910_v10 }
 0x403   :  { %v819_v0 = vpop.f32.mrf.mxu0 }
 0x404   :  { %904 = vst [vmem:[%s2218_s2 + $0xd0] sm:$0xff] %v872_v49 }
 0x405   :  { %v822_v9 = vpop.f32.mrf.mxu0 }
 0x406   :  { %v873_v26 = vadd.f32 %v822_v9, %v1914_v3 }
 0x407   :  { %v824_v46 = vpop.f32.mrf.mxu0 }
 0x408   :  { %905 = vst [vmem:[%s2218_s2 + $0xd8] sm:$0xff] %v873_v26 }
 0x409   :  { %v827_v20 = vpop.f32.mrf.mxu0 }
 0x40a   :  { %v874_v45 = vadd.f32 %v827_v20, %v1918_v31 }
 0x40b   :  { %v829_v6 = vpop.f32.mrf.mxu0 }
 0x40c   :  { %906 = vst [vmem:[%s2218_s2 + $0xe0] sm:$0xff] %v874_v45 }
 0x40d   :  { %v832_v10 = vpop.f32.mrf.mxu0 }
 0x40e   :  { %v875_v42 = vadd.f32 %v832_v10, %v1924_v30 }
 0x40f   :  { %v834_v34 = vpop.f32.mrf.mxu0 }
 0x410   :  { %907 = vst [vmem:[%s2218_s2 + $0xe8] sm:$0xff] %v875_v42 }
 0x411   :  { %v837_v3 = vpop.f32.mrf.mxu0 }
 0x412   :  { %v876_v35 = vadd.f32 %v837_v3, %v1930_v14 }
 0x413   :  { %v839_v39 = vpop.f32.mrf.mxu0 }
 0x414   :  { %908 = vst [vmem:[%s2218_s2 + $0xf0] sm:$0xff] %v876_v35 }
 0x415   :  { %v842_v31 = vpop.f32.mrf.mxu0 }
 0x416   :  { %v877_v21 = vadd.f32 %v842_v31, %v1936_v57 }
 0x417   :  { %v844_v40 = vpop.f32.mrf.mxu0 }
 0x418   :  { %909 = vst [vmem:[%s2218_s2 + $0xf8] sm:$0xff] %v877_v21 }

</bundles_post_ra>
